<compile_context>
chip_gen: v7x
topology: tpu7x:2x2x1
jax: 0.10.0
libtpu: 0.0.40
codegen_flags: <defaults>
</compile_context>

<pallas_src>
import functools

import jax
import jax.numpy as jnp
from jax.experimental import pallas as pl
from jax.experimental.pallas import tpu as pltpu


# ----------------------------------------------------------------------------
# Fused Pallas kernel: num_layers x LSTM + FC head
# ----------------------------------------------------------------------------
def fused_lstm_fc_kernel(x_ref, *refs, num_layers, hidden, T, Bp):
    """refs = [w_ih_0, w_hh_0, b_0, ..., w_ih_L-1, w_hh_L-1, b_L-1,
               fc_w, fc_b, out_ref, seq_scratch]."""
    H = hidden
    layer_refs = refs[:3 * num_layers]
    fc_w_ref = refs[3 * num_layers + 0]
    fc_b_ref = refs[3 * num_layers + 1]
    out_ref = refs[3 * num_layers + 2]
    seq_scr = refs[3 * num_layers + 3]

    # Lane mask selecting the "g" gate (tanh) lanes; hoisted out of all loops
    # (JAX does not CSE broadcast_in_dim).
    lane = jax.lax.broadcasted_iota(jnp.int32, (Bp, 4 * H), 1)
    is_g_lane = jnp.logical_and(lane >= 2 * H, lane < 3 * H)

    seq = x_ref[...]                               # (T*Bp, Fin), bf16
    h = None
    for layer in range(num_layers):
        w_ih = layer_refs[3 * layer + 0][...]      # (Fin, 4H) bf16
        w_hh = layer_refs[3 * layer + 1][...]      # (H,   4H) bf16
        b = layer_refs[3 * layer + 2][...]         # (1,   4H) f32

        # Hoisted input projection: one MXU matmul for all timesteps of the layer.
        pre = jnp.dot(seq, w_ih, preferred_element_type=jnp.float32) + b  # (T*Bp,4H)

        h = jnp.zeros((Bp, H), jnp.float32)
        c = jnp.zeros((Bp, H), jnp.float32)
        last_layer = (layer + 1 == num_layers)

        for t in range(T):
            gates = pre[t * Bp:(t + 1) * Bp, :] + jnp.dot(
                h.astype(jnp.bfloat16), w_hh, preferred_element_type=jnp.float32)
            # Full-vreg nonlinearity: sigmoid on i/f/o lanes, tanh on g lanes.
            act = jnp.where(is_g_lane, jnp.tanh(gates), jax.nn.sigmoid(gates))
            i_g = act[:, 0 * H:1 * H]
            f_g = act[:, 1 * H:2 * H]
            g_g = act[:, 2 * H:3 * H]
            o_g = act[:, 3 * H:4 * H]
            c = f_g * c + i_g * g_g
            h = o_g * jnp.tanh(c)
            if not last_layer:
                seq_scr[t * Bp:(t + 1) * Bp, :] = h     # stays in VMEM
        if not last_layer:
            seq = seq_scr[...].astype(jnp.bfloat16)     # input of the next layer

    # FC epilogue on the final hidden state only (out[:, -1, :] @ W_fc + b_fc).
    out = jnp.dot(h.astype(jnp.bfloat16), fc_w_ref[...],
                  preferred_element_type=jnp.float32) + fc_b_ref[...]
    out_ref[...] = out.astype(out_ref.dtype)


# ----------------------------------------------------------------------------
# Wrapper
# ----------------------------------------------------------------------------
def lstm_model_forward(x_btf, params):
    """Full forward of the PyTorch LSTM module (batch_first=True).

    x_btf: (B, T, F).  Returns (B, num_classes)."""
    B, T, F = x_btf.shape
    layers = params["lstm_layers"]
    num_layers = len(layers)
    H = layers[0][1].shape[0]
    C = params["fc_w_t"].shape[1]
    Bp = max(8, -(-B // 8) * 8)                      # pad batch to sublane width

    x_tbf = jnp.transpose(x_btf, (1, 0, 2))          # time-major for the kernel
    if Bp != B:
        x_tbf = jnp.pad(x_tbf, ((0, 0), (0, Bp - B), (0, 0)))
    x_flat = x_tbf.reshape(T * Bp, F).astype(jnp.bfloat16)

    args = [x_flat]
    in_specs = [pl.BlockSpec((T * Bp, F), lambda: (0, 0))]
    for (w_ih_t, w_hh_t, b) in layers:
        args += [w_ih_t.astype(jnp.bfloat16), w_hh_t.astype(jnp.bfloat16), b]
        in_specs += [
            pl.BlockSpec(w_ih_t.shape, lambda: (0, 0)),
            pl.BlockSpec(w_hh_t.shape, lambda: (0, 0)),
            pl.BlockSpec(b.shape, lambda: (0, 0)),
        ]
    fc_w = params["fc_w_t"].astype(jnp.bfloat16)
    fc_b = params["fc_b"]
    args += [fc_w, fc_b]
    in_specs += [pl.BlockSpec(fc_w.shape, lambda: (0, 0)),
                 pl.BlockSpec(fc_b.shape, lambda: (0, 0))]

    out_padded = pl.pallas_call(
        functools.partial(fused_lstm_fc_kernel, num_layers=num_layers,
                          hidden=H, T=T, Bp=Bp),
        out_shape=jax.ShapeDtypeStruct((Bp, C), jnp.float32),
        in_specs=in_specs,
        out_specs=pl.BlockSpec((Bp, C), lambda: (0, 0)),
        scratch_shapes=[pltpu.VMEM((T * Bp, H), jnp.float32)],  # inter-layer seq
    )(*args)
    return out_padded[:B]


# ----------------------------------------------------------------------------
# Pure-JAX reference (f32 throughout, for correctness check)
# ----------------------------------------------------------------------------
def lstm_model_reference(x_btf, params):
    x_tbf = jnp.transpose(x_btf, (1, 0, 2))
    h_seq = x_tbf
    for (w_ih_t, w_hh_t, b) in params["lstm_layers"]:
        B = h_seq.shape[1]
        H = w_hh_t.shape[0]

        def step(carry, x_t):
            h, c = carry
            g = x_t @ w_ih_t + h @ w_hh_t + b[0]
            i = jax.nn.sigmoid(g[:, 0 * H:1 * H])
            f = jax.nn.sigmoid(g[:, 1 * H:2 * H])
            gg = jnp.tanh(g[:, 2 * H:3 * H])
            o = jax.nn.sigmoid(g[:, 3 * H:4 * H])
            c = f * c + i * gg
            h = o * jnp.tanh(c)
            return (h, c), h

        init = (jnp.zeros((B, H), jnp.float32), jnp.zeros((B, H), jnp.float32))
        _, h_seq = jax.lax.scan(step, init, h_seq)
    return h_seq[-1] @ params["fc_w_t"] + params["fc_b"][0]


# ----------------------------------------------------------------------------
# Deterministic parameter construction (PyTorch nn.LSTM shapes)
# ----------------------------------------------------------------------------
def make_params(key, n_feature, hidden, num_layers, num_classes):
    layers = []
    for layer in range(num_layers):
        in_size = n_feature if layer == 0 else hidden
        key, k1, k2, k3, k4 = jax.random.split(key, 5)
        # PyTorch shapes: weight_ih (4H, in), weight_hh (4H, H), biases (4H,)
        w_ih = 0.1 * jax.random.normal(k1, (4 * hidden, in_size), jnp.float32)
        w_hh = 0.1 * jax.random.normal(k2, (4 * hidden, hidden), jnp.float32)
        b_ih = 0.1 * jax.random.normal(k3, (4 * hidden,), jnp.float32)
        b_hh = 0.1 * jax.random.normal(k4, (4 * hidden,), jnp.float32)
        layers.append((w_ih.T, w_hh.T, (b_ih + b_hh)[None, :]))
    key, k5, k6 = jax.random.split(key, 3)
    fc_w = 0.1 * jax.random.normal(k5, (num_classes, hidden), jnp.float32)
    fc_b = 0.1 * jax.random.normal(k6, (num_classes,), jnp.float32)
    return {"lstm_layers": layers, "fc_w_t": fc_w.T, "fc_b": fc_b[None, :]}


# ----------------------------------------------------------------------------
if __name__ == "__main__":
    B, T, F = 2, 8, 16          # batch, seq, n_feature
    HIDDEN, LAYERS, CLASSES = 32, 2, 8

    key = jax.random.PRNGKey(0)
    k_x, k_p = jax.random.split(key)
    x = jax.random.normal(k_x, (B, T, F), jnp.float32)   # batch_first input
    params = make_params(k_p, F, HIDDEN, LAYERS, CLASSES)

    out = lstm_model_forward(x, params)
    out = jax.block_until_ready(out)

    ref = lstm_model_reference(x, params)
    assert out.shape == (B, CLASSES)
    # bf16 matmul inputs (f32 accumulation) -> loosened tolerance vs f32 reference
    assert jnp.allclose(out, ref, atol=3e-2, rtol=3e-2), "mismatch vs reference"

    print("KERNEL_OK")
</pallas_src>

<mosaic_0001>
module attributes {stable_mosaic.version = 11 : i64} {
  func.func @fused_lstm_fc_kernel(%arg0: memref<64x16xbf16, #tpu.memory_space<vmem>>, %arg1: memref<16x128xbf16, #tpu.memory_space<vmem>>, %arg2: memref<32x128xbf16, #tpu.memory_space<vmem>>, %arg3: memref<1x128xf32, #tpu.memory_space<vmem>>, %arg4: memref<32x128xbf16, #tpu.memory_space<vmem>>, %arg5: memref<32x128xbf16, #tpu.memory_space<vmem>>, %arg6: memref<1x128xf32, #tpu.memory_space<vmem>>, %arg7: memref<32x8xbf16, #tpu.memory_space<vmem>>, %arg8: memref<1x8xf32, #tpu.memory_space<vmem>>, %arg9: memref<8x8xf32, #tpu.memory_space<vmem>>, %arg10: memref<64x32xf32, #tpu.memory_space<vmem>>) attributes {dimension_semantics = [], scalar_prefetch = 0 : i64, scratch_operands = 1 : i64, tpu.core_type = #tpu.core_type<tc>} {
    %0 = tpu.iota {dimensions = array<i32: 1>} : vector<8x128xi32>
    %c64_i32 = arith.constant 64 : i32
    %1 = vector.broadcast %c64_i32 : i32 to vector<8x128xi32>
    %2 = arith.cmpi sge, %0, %1 : vector<8x128xi32>
    %c96_i32 = arith.constant 96 : i32
    %3 = vector.broadcast %c96_i32 : i32 to vector<8x128xi32>
    %4 = arith.cmpi slt, %0, %3 : vector<8x128xi32>
    %5 = arith.andi %2, %4 : vector<8x128xi1>
    %c0 = arith.constant 0 : index
    %c0_0 = arith.constant 0 : index
    %6 = vector.load %arg0[%c0, %c0_0] : memref<64x16xbf16, #tpu.memory_space<vmem>>, vector<64x16xbf16>
    %c0_1 = arith.constant 0 : index
    %c0_2 = arith.constant 0 : index
    %7 = vector.load %arg1[%c0_1, %c0_2] : memref<16x128xbf16, #tpu.memory_space<vmem>>, vector<16x128xbf16>
    %c0_3 = arith.constant 0 : index
    %c0_4 = arith.constant 0 : index
    %8 = vector.load %arg2[%c0_3, %c0_4] : memref<32x128xbf16, #tpu.memory_space<vmem>>, vector<32x128xbf16>
    %c0_5 = arith.constant 0 : index
    %c0_6 = arith.constant 0 : index
    %9 = vector.load %arg3[%c0_5, %c0_6] : memref<1x128xf32, #tpu.memory_space<vmem>>, vector<1x128xf32>
    %cst = arith.constant dense<0.000000e+00> : vector<64x128xf32>
    %10 = tpu.matmul %6, %7, %cst {dimension_numbers = #tpu.dot_dimension_numbers<[1], [0], [0], [1], [0, 0, 1, 1], [], []>} : vector<64x16xbf16>, vector<16x128xbf16>, vector<64x128xf32> -> vector<64x128xf32>
    %11 = vector.broadcast %9 : vector<1x128xf32> to vector<64x128xf32>
    %12 = arith.addf %10, %11 : vector<64x128xf32>
    %cst_7 = arith.constant 0.000000e+00 : f32
    %13 = vector.broadcast %cst_7 : f32 to vector<8x32xf32>
    %cst_8 = arith.constant 0.000000e+00 : f32
    %14 = vector.broadcast %cst_8 : f32 to vector<8x32xf32>
    %15 = vector.extract_strided_slice %12 {offsets = [0, 0], sizes = [8, 128], strides = [1, 1]} : vector<64x128xf32> to vector<8x128xf32>
    %16 = arith.truncf %13 : vector<8x32xf32> to vector<8x32xbf16>
    %cst_9 = arith.constant dense<0.000000e+00> : vector<8x128xf32>
    %17 = tpu.matmul %16, %8, %cst_9 {dimension_numbers = #tpu.dot_dimension_numbers<[1], [0], [0], [1], [0, 0, 1, 1], [], []>} : vector<8x32xbf16>, vector<32x128xbf16>, vector<8x128xf32> -> vector<8x128xf32>
    %18 = arith.addf %15, %17 : vector<8x128xf32>
    %19 = math.tanh %18 : vector<8x128xf32>
    %20 = arith.negf %18 : vector<8x128xf32>
    %21 = math.exp %20 : vector<8x128xf32>
    %cst_10 = arith.constant 1.000000e+00 : f32
    %22 = vector.broadcast %cst_10 : f32 to vector<8x128xf32>
    %23 = arith.addf %22, %21 : vector<8x128xf32>
    %24 = arith.divf %22, %23 : vector<8x128xf32>
    %25 = arith.select %5, %19, %24 : vector<8x128xi1>, vector<8x128xf32>
    %26 = vector.extract_strided_slice %25 {offsets = [0, 0], sizes = [8, 32], strides = [1, 1]} : vector<8x128xf32> to vector<8x32xf32>
    %27 = vector.extract_strided_slice %25 {offsets = [0, 32], sizes = [8, 32], strides = [1, 1]} : vector<8x128xf32> to vector<8x32xf32>
    %28 = vector.extract_strided_slice %25 {offsets = [0, 64], sizes = [8, 32], strides = [1, 1]} : vector<8x128xf32> to vector<8x32xf32>
    %29 = vector.extract_strided_slice %25 {offsets = [0, 96], sizes = [8, 32], strides = [1, 1]} : vector<8x128xf32> to vector<8x32xf32>
    %30 = arith.mulf %27, %14 : vector<8x32xf32>
    %31 = arith.mulf %26, %28 : vector<8x32xf32>
    %32 = arith.addf %30, %31 : vector<8x32xf32>
    %33 = math.tanh %32 : vector<8x32xf32>
    %34 = arith.mulf %29, %33 : vector<8x32xf32>
    %c0_11 = arith.constant 0 : index
    %c0_12 = arith.constant 0 : index
    %35 = vector.load %arg10[%c0_11, %c0_12] : memref<64x32xf32, #tpu.memory_space<vmem>>, vector<8x32xf32>
    tpu.vector_store %arg10[%c0_11, %c0_12], %34 {strides = array<i32>} : memref<64x32xf32, #tpu.memory_space<vmem>>, vector<8x32xf32>,
    %36 = vector.extract_strided_slice %12 {offsets = [8, 0], sizes = [8, 128], strides = [1, 1]} : vector<64x128xf32> to vector<8x128xf32>
    %37 = arith.truncf %34 : vector<8x32xf32> to vector<8x32xbf16>
    %cst_13 = arith.constant dense<0.000000e+00> : vector<8x128xf32>
    %38 = tpu.matmul %37, %8, %cst_13 {dimension_numbers = #tpu.dot_dimension_numbers<[1], [0], [0], [1], [0, 0, 1, 1], [], []>} : vector<8x32xbf16>, vector<32x128xbf16>, vector<8x128xf32> -> vector<8x128xf32>
    %39 = arith.addf %36, %38 : vector<8x128xf32>
    %40 = math.tanh %39 : vector<8x128xf32>
    %41 = arith.negf %39 : vector<8x128xf32>
    %42 = math.exp %41 : vector<8x128xf32>
    %cst_14 = arith.constant 1.000000e+00 : f32
    %43 = vector.broadcast %cst_14 : f32 to vector<8x128xf32>
    %44 = arith.addf %43, %42 : vector<8x128xf32>
    %45 = arith.divf %43, %44 : vector<8x128xf32>
    %46 = arith.select %5, %40, %45 : vector<8x128xi1>, vector<8x128xf32>
    %47 = vector.extract_strided_slice %46 {offsets = [0, 0], sizes = [8, 32], strides = [1, 1]} : vector<8x128xf32> to vector<8x32xf32>
    %48 = vector.extract_strided_slice %46 {offsets = [0, 32], sizes = [8, 32], strides = [1, 1]} : vector<8x128xf32> to vector<8x32xf32>
    %49 = vector.extract_strided_slice %46 {offsets = [0, 64], sizes = [8, 32], strides = [1, 1]} : vector<8x128xf32> to vector<8x32xf32>
    %50 = vector.extract_strided_slice %46 {offsets = [0, 96], sizes = [8, 32], strides = [1, 1]} : vector<8x128xf32> to vector<8x32xf32>
    %51 = arith.mulf %48, %32 : vector<8x32xf32>
    %52 = arith.mulf %47, %49 : vector<8x32xf32>
    %53 = arith.addf %51, %52 : vector<8x32xf32>
    %54 = math.tanh %53 : vector<8x32xf32>
    %55 = arith.mulf %50, %54 : vector<8x32xf32>
    %c8 = arith.constant 8 : index
    %c0_15 = arith.constant 0 : index
    %56 = vector.load %arg10[%c8, %c0_15] : memref<64x32xf32, #tpu.memory_space<vmem>>, vector<8x32xf32>
    tpu.vector_store %arg10[%c8, %c0_15], %55 {strides = array<i32>} : memref<64x32xf32, #tpu.memory_space<vmem>>, vector<8x32xf32>,
    %57 = vector.extract_strided_slice %12 {offsets = [16, 0], sizes = [8, 128], strides = [1, 1]} : vector<64x128xf32> to vector<8x128xf32>
    %58 = arith.truncf %55 : vector<8x32xf32> to vector<8x32xbf16>
    %cst_16 = arith.constant dense<0.000000e+00> : vector<8x128xf32>
    %59 = tpu.matmul %58, %8, %cst_16 {dimension_numbers = #tpu.dot_dimension_numbers<[1], [0], [0], [1], [0, 0, 1, 1], [], []>} : vector<8x32xbf16>, vector<32x128xbf16>, vector<8x128xf32> -> vector<8x128xf32>
    %60 = arith.addf %57, %59 : vector<8x128xf32>
    %61 = math.tanh %60 : vector<8x128xf32>
    %62 = arith.negf %60 : vector<8x128xf32>
    %63 = math.exp %62 : vector<8x128xf32>
    %cst_17 = arith.constant 1.000000e+00 : f32
    %64 = vector.broadcast %cst_17 : f32 to vector<8x128xf32>
    %65 = arith.addf %64, %63 : vector<8x128xf32>
    %66 = arith.divf %64, %65 : vector<8x128xf32>
    %67 = arith.select %5, %61, %66 : vector<8x128xi1>, vector<8x128xf32>
    %68 = vector.extract_strided_slice %67 {offsets = [0, 0], sizes = [8, 32], strides = [1, 1]} : vector<8x128xf32> to vector<8x32xf32>
    %69 = vector.extract_strided_slice %67 {offsets = [0, 32], sizes = [8, 32], strides = [1, 1]} : vector<8x128xf32> to vector<8x32xf32>
    %70 = vector.extract_strided_slice %67 {offsets = [0, 64], sizes = [8, 32], strides = [1, 1]} : vector<8x128xf32> to vector<8x32xf32>
    %71 = vector.extract_strided_slice %67 {offsets = [0, 96], sizes = [8, 32], strides = [1, 1]} : vector<8x128xf32> to vector<8x32xf32>
    %72 = arith.mulf %69, %53 : vector<8x32xf32>
    %73 = arith.mulf %68, %70 : vector<8x32xf32>
    %74 = arith.addf %72, %73 : vector<8x32xf32>
    %75 = math.tanh %74 : vector<8x32xf32>
    %76 = arith.mulf %71, %75 : vector<8x32xf32>
    %c16 = arith.constant 16 : index
    %c0_18 = arith.constant 0 : index
    %77 = vector.load %arg10[%c16, %c0_18] : memref<64x32xf32, #tpu.memory_space<vmem>>, vector<8x32xf32>
    tpu.vector_store %arg10[%c16, %c0_18], %76 {strides = array<i32>} : memref<64x32xf32, #tpu.memory_space<vmem>>, vector<8x32xf32>,
    %78 = vector.extract_strided_slice %12 {offsets = [24, 0], sizes = [8, 128], strides = [1, 1]} : vector<64x128xf32> to vector<8x128xf32>
    %79 = arith.truncf %76 : vector<8x32xf32> to vector<8x32xbf16>
    %cst_19 = arith.constant dense<0.000000e+00> : vector<8x128xf32>
    %80 = tpu.matmul %79, %8, %cst_19 {dimension_numbers = #tpu.dot_dimension_numbers<[1], [0], [0], [1], [0, 0, 1, 1], [], []>} : vector<8x32xbf16>, vector<32x128xbf16>, vector<8x128xf32> -> vector<8x128xf32>
    %81 = arith.addf %78, %80 : vector<8x128xf32>
    %82 = math.tanh %81 : vector<8x128xf32>
    %83 = arith.negf %81 : vector<8x128xf32>
    %84 = math.exp %83 : vector<8x128xf32>
    %cst_20 = arith.constant 1.000000e+00 : f32
    %85 = vector.broadcast %cst_20 : f32 to vector<8x128xf32>
    %86 = arith.addf %85, %84 : vector<8x128xf32>
    %87 = arith.divf %85, %86 : vector<8x128xf32>
    %88 = arith.select %5, %82, %87 : vector<8x128xi1>, vector<8x128xf32>
    %89 = vector.extract_strided_slice %88 {offsets = [0, 0], sizes = [8, 32], strides = [1, 1]} : vector<8x128xf32> to vector<8x32xf32>
    %90 = vector.extract_strided_slice %88 {offsets = [0, 32], sizes = [8, 32], strides = [1, 1]} : vector<8x128xf32> to vector<8x32xf32>
    %91 = vector.extract_strided_slice %88 {offsets = [0, 64], sizes = [8, 32], strides = [1, 1]} : vector<8x128xf32> to vector<8x32xf32>
    %92 = vector.extract_strided_slice %88 {offsets = [0, 96], sizes = [8, 32], strides = [1, 1]} : vector<8x128xf32> to vector<8x32xf32>
    %93 = arith.mulf %90, %74 : vector<8x32xf32>
    %94 = arith.mulf %89, %91 : vector<8x32xf32>
    %95 = arith.addf %93, %94 : vector<8x32xf32>
    %96 = math.tanh %95 : vector<8x32xf32>
    %97 = arith.mulf %92, %96 : vector<8x32xf32>
    %c24 = arith.constant 24 : index
    %c0_21 = arith.constant 0 : index
    %98 = vector.load %arg10[%c24, %c0_21] : memref<64x32xf32, #tpu.memory_space<vmem>>, vector<8x32xf32>
    tpu.vector_store %arg10[%c24, %c0_21], %97 {strides = array<i32>} : memref<64x32xf32, #tpu.memory_space<vmem>>, vector<8x32xf32>,
    %99 = vector.extract_strided_slice %12 {offsets = [32, 0], sizes = [8, 128], strides = [1, 1]} : vector<64x128xf32> to vector<8x128xf32>
    %100 = arith.truncf %97 : vector<8x32xf32> to vector<8x32xbf16>
    %cst_22 = arith.constant dense<0.000000e+00> : vector<8x128xf32>
    %101 = tpu.matmul %100, %8, %cst_22 {dimension_numbers = #tpu.dot_dimension_numbers<[1], [0], [0], [1], [0, 0, 1, 1], [], []>} : vector<8x32xbf16>, vector<32x128xbf16>, vector<8x128xf32> -> vector<8x128xf32>
    %102 = arith.addf %99, %101 : vector<8x128xf32>
    %103 = math.tanh %102 : vector<8x128xf32>
    %104 = arith.negf %102 : vector<8x128xf32>
    %105 = math.exp %104 : vector<8x128xf32>
    %cst_23 = arith.constant 1.000000e+00 : f32
    %106 = vector.broadcast %cst_23 : f32 to vector<8x128xf32>
    %107 = arith.addf %106, %105 : vector<8x128xf32>
    %108 = arith.divf %106, %107 : vector<8x128xf32>
    %109 = arith.select %5, %103, %108 : vector<8x128xi1>, vector<8x128xf32>
    %110 = vector.extract_strided_slice %109 {offsets = [0, 0], sizes = [8, 32], strides = [1, 1]} : vector<8x128xf32> to vector<8x32xf32>
    %111 = vector.extract_strided_slice %109 {offsets = [0, 32], sizes = [8, 32], strides = [1, 1]} : vector<8x128xf32> to vector<8x32xf32>
    %112 = vector.extract_strided_slice %109 {offsets = [0, 64], sizes = [8, 32], strides = [1, 1]} : vector<8x128xf32> to vector<8x32xf32>
    %113 = vector.extract_strided_slice %109 {offsets = [0, 96], sizes = [8, 32], strides = [1, 1]} : vector<8x128xf32> to vector<8x32xf32>
    %114 = arith.mulf %111, %95 : vector<8x32xf32>
    %115 = arith.mulf %110, %112 : vector<8x32xf32>
    %116 = arith.addf %114, %115 : vector<8x32xf32>
    %117 = math.tanh %116 : vector<8x32xf32>
    %118 = arith.mulf %113, %117 : vector<8x32xf32>
    %c32 = arith.constant 32 : index
    %c0_24 = arith.constant 0 : index
    %119 = vector.load %arg10[%c32, %c0_24] : memref<64x32xf32, #tpu.memory_space<vmem>>, vector<8x32xf32>
    tpu.vector_store %arg10[%c32, %c0_24], %118 {strides = array<i32>} : memref<64x32xf32, #tpu.memory_space<vmem>>, vector<8x32xf32>,
    %120 = vector.extract_strided_slice %12 {offsets = [40, 0], sizes = [8, 128], strides = [1, 1]} : vector<64x128xf32> to vector<8x128xf32>
    %121 = arith.truncf %118 : vector<8x32xf32> to vector<8x32xbf16>
    %cst_25 = arith.constant dense<0.000000e+00> : vector<8x128xf32>
    %122 = tpu.matmul %121, %8, %cst_25 {dimension_numbers = #tpu.dot_dimension_numbers<[1], [0], [0], [1], [0, 0, 1, 1], [], []>} : vector<8x32xbf16>, vector<32x128xbf16>, vector<8x128xf32> -> vector<8x128xf32>
    %123 = arith.addf %120, %122 : vector<8x128xf32>
    %124 = math.tanh %123 : vector<8x128xf32>
    %125 = arith.negf %123 : vector<8x128xf32>
    %126 = math.exp %125 : vector<8x128xf32>
    %cst_26 = arith.constant 1.000000e+00 : f32
    %127 = vector.broadcast %cst_26 : f32 to vector<8x128xf32>
    %128 = arith.addf %127, %126 : vector<8x128xf32>
    %129 = arith.divf %127, %128 : vector<8x128xf32>
    %130 = arith.select %5, %124, %129 : vector<8x128xi1>, vector<8x128xf32>
    %131 = vector.extract_strided_slice %130 {offsets = [0, 0], sizes = [8, 32], strides = [1, 1]} : vector<8x128xf32> to vector<8x32xf32>
    %132 = vector.extract_strided_slice %130 {offsets = [0, 32], sizes = [8, 32], strides = [1, 1]} : vector<8x128xf32> to vector<8x32xf32>
    %133 = vector.extract_strided_slice %130 {offsets = [0, 64], sizes = [8, 32], strides = [1, 1]} : vector<8x128xf32> to vector<8x32xf32>
    %134 = vector.extract_strided_slice %130 {offsets = [0, 96], sizes = [8, 32], strides = [1, 1]} : vector<8x128xf32> to vector<8x32xf32>
    %135 = arith.mulf %132, %116 : vector<8x32xf32>
    %136 = arith.mulf %131, %133 : vector<8x32xf32>
    %137 = arith.addf %135, %136 : vector<8x32xf32>
    %138 = math.tanh %137 : vector<8x32xf32>
    %139 = arith.mulf %134, %138 : vector<8x32xf32>
    %c40 = arith.constant 40 : index
    %c0_27 = arith.constant 0 : index
    %140 = vector.load %arg10[%c40, %c0_27] : memref<64x32xf32, #tpu.memory_space<vmem>>, vector<8x32xf32>
    tpu.vector_store %arg10[%c40, %c0_27], %139 {strides = array<i32>} : memref<64x32xf32, #tpu.memory_space<vmem>>, vector<8x32xf32>,
    %141 = vector.extract_strided_slice %12 {offsets = [48, 0], sizes = [8, 128], strides = [1, 1]} : vector<64x128xf32> to vector<8x128xf32>
    %142 = arith.truncf %139 : vector<8x32xf32> to vector<8x32xbf16>
    %cst_28 = arith.constant dense<0.000000e+00> : vector<8x128xf32>
    %143 = tpu.matmul %142, %8, %cst_28 {dimension_numbers = #tpu.dot_dimension_numbers<[1], [0], [0], [1], [0, 0, 1, 1], [], []>} : vector<8x32xbf16>, vector<32x128xbf16>, vector<8x128xf32> -> vector<8x128xf32>
    %144 = arith.addf %141, %143 : vector<8x128xf32>
    %145 = math.tanh %144 : vector<8x128xf32>
    %146 = arith.negf %144 : vector<8x128xf32>
    %147 = math.exp %146 : vector<8x128xf32>
    %cst_29 = arith.constant 1.000000e+00 : f32
    %148 = vector.broadcast %cst_29 : f32 to vector<8x128xf32>
    %149 = arith.addf %148, %147 : vector<8x128xf32>
    %150 = arith.divf %148, %149 : vector<8x128xf32>
    %151 = arith.select %5, %145, %150 : vector<8x128xi1>, vector<8x128xf32>
    %152 = vector.extract_strided_slice %151 {offsets = [0, 0], sizes = [8, 32], strides = [1, 1]} : vector<8x128xf32> to vector<8x32xf32>
    %153 = vector.extract_strided_slice %151 {offsets = [0, 32], sizes = [8, 32], strides = [1, 1]} : vector<8x128xf32> to vector<8x32xf32>
    %154 = vector.extract_strided_slice %151 {offsets = [0, 64], sizes = [8, 32], strides = [1, 1]} : vector<8x128xf32> to vector<8x32xf32>
    %155 = vector.extract_strided_slice %151 {offsets = [0, 96], sizes = [8, 32], strides = [1, 1]} : vector<8x128xf32> to vector<8x32xf32>
    %156 = arith.mulf %153, %137 : vector<8x32xf32>
    %157 = arith.mulf %152, %154 : vector<8x32xf32>
    %158 = arith.addf %156, %157 : vector<8x32xf32>
    %159 = math.tanh %158 : vector<8x32xf32>
    %160 = arith.mulf %155, %159 : vector<8x32xf32>
    %c48 = arith.constant 48 : index
    %c0_30 = arith.constant 0 : index
    %161 = vector.load %arg10[%c48, %c0_30] : memref<64x32xf32, #tpu.memory_space<vmem>>, vector<8x32xf32>
    tpu.vector_store %arg10[%c48, %c0_30], %160 {strides = array<i32>} : memref<64x32xf32, #tpu.memory_space<vmem>>, vector<8x32xf32>,
    %162 = vector.extract_strided_slice %12 {offsets = [56, 0], sizes = [8, 128], strides = [1, 1]} : vector<64x128xf32> to vector<8x128xf32>
    %163 = arith.truncf %160 : vector<8x32xf32> to vector<8x32xbf16>
    %cst_31 = arith.constant dense<0.000000e+00> : vector<8x128xf32>
    %164 = tpu.matmul %163, %8, %cst_31 {dimension_numbers = #tpu.dot_dimension_numbers<[1], [0], [0], [1], [0, 0, 1, 1], [], []>} : vector<8x32xbf16>, vector<32x128xbf16>, vector<8x128xf32> -> vector<8x128xf32>
    %165 = arith.addf %162, %164 : vector<8x128xf32>
    %166 = math.tanh %165 : vector<8x128xf32>
    %167 = arith.negf %165 : vector<8x128xf32>
    %168 = math.exp %167 : vector<8x128xf32>
    %cst_32 = arith.constant 1.000000e+00 : f32
    %169 = vector.broadcast %cst_32 : f32 to vector<8x128xf32>
    %170 = arith.addf %169, %168 : vector<8x128xf32>
    %171 = arith.divf %169, %170 : vector<8x128xf32>
    %172 = arith.select %5, %166, %171 : vector<8x128xi1>, vector<8x128xf32>
    %173 = vector.extract_strided_slice %172 {offsets = [0, 0], sizes = [8, 32], strides = [1, 1]} : vector<8x128xf32> to vector<8x32xf32>
    %174 = vector.extract_strided_slice %172 {offsets = [0, 32], sizes = [8, 32], strides = [1, 1]} : vector<8x128xf32> to vector<8x32xf32>
    %175 = vector.extract_strided_slice %172 {offsets = [0, 64], sizes = [8, 32], strides = [1, 1]} : vector<8x128xf32> to vector<8x32xf32>
    %176 = vector.extract_strided_slice %172 {offsets = [0, 96], sizes = [8, 32], strides = [1, 1]} : vector<8x128xf32> to vector<8x32xf32>
    %177 = arith.mulf %174, %158 : vector<8x32xf32>
    %178 = arith.mulf %173, %175 : vector<8x32xf32>
    %179 = arith.addf %177, %178 : vector<8x32xf32>
    %180 = math.tanh %179 : vector<8x32xf32>
    %181 = arith.mulf %176, %180 : vector<8x32xf32>
    %c56 = arith.constant 56 : index
    %c0_33 = arith.constant 0 : index
    %182 = vector.load %arg10[%c56, %c0_33] : memref<64x32xf32, #tpu.memory_space<vmem>>, vector<8x32xf32>
    tpu.vector_store %arg10[%c56, %c0_33], %181 {strides = array<i32>} : memref<64x32xf32, #tpu.memory_space<vmem>>, vector<8x32xf32>,
    %c0_34 = arith.constant 0 : index
    %c0_35 = arith.constant 0 : index
    %183 = vector.load %arg10[%c0_34, %c0_35] : memref<64x32xf32, #tpu.memory_space<vmem>>, vector<64x32xf32>
    %184 = arith.truncf %183 : vector<64x32xf32> to vector<64x32xbf16>
    %c0_36 = arith.constant 0 : index
    %c0_37 = arith.constant 0 : index
    %185 = vector.load %arg4[%c0_36, %c0_37] : memref<32x128xbf16, #tpu.memory_space<vmem>>, vector<32x128xbf16>
    %c0_38 = arith.constant 0 : index
    %c0_39 = arith.constant 0 : index
    %186 = vector.load %arg5[%c0_38, %c0_39] : memref<32x128xbf16, #tpu.memory_space<vmem>>, vector<32x128xbf16>
    %c0_40 = arith.constant 0 : index
    %c0_41 = arith.constant 0 : index
    %187 = vector.load %arg6[%c0_40, %c0_41] : memref<1x128xf32, #tpu.memory_space<vmem>>, vector<1x128xf32>
    %cst_42 = arith.constant dense<0.000000e+00> : vector<64x128xf32>
    %188 = tpu.matmul %184, %185, %cst_42 {dimension_numbers = #tpu.dot_dimension_numbers<[1], [0], [0], [1], [0, 0, 1, 1], [], []>} : vector<64x32xbf16>, vector<32x128xbf16>, vector<64x128xf32> -> vector<64x128xf32>
    %189 = vector.broadcast %187 : vector<1x128xf32> to vector<64x128xf32>
    %190 = arith.addf %188, %189 : vector<64x128xf32>
    %cst_43 = arith.constant 0.000000e+00 : f32
    %191 = vector.broadcast %cst_43 : f32 to vector<8x32xf32>
    %cst_44 = arith.constant 0.000000e+00 : f32
    %192 = vector.broadcast %cst_44 : f32 to vector<8x32xf32>
    %193 = vector.extract_strided_slice %190 {offsets = [0, 0], sizes = [8, 128], strides = [1, 1]} : vector<64x128xf32> to vector<8x128xf32>
    %194 = arith.truncf %191 : vector<8x32xf32> to vector<8x32xbf16>
    %cst_45 = arith.constant dense<0.000000e+00> : vector<8x128xf32>
    %195 = tpu.matmul %194, %186, %cst_45 {dimension_numbers = #tpu.dot_dimension_numbers<[1], [0], [0], [1], [0, 0, 1, 1], [], []>} : vector<8x32xbf16>, vector<32x128xbf16>, vector<8x128xf32> -> vector<8x128xf32>
    %196 = arith.addf %193, %195 : vector<8x128xf32>
    %197 = math.tanh %196 : vector<8x128xf32>
    %198 = arith.negf %196 : vector<8x128xf32>
    %199 = math.exp %198 : vector<8x128xf32>
    %cst_46 = arith.constant 1.000000e+00 : f32
    %200 = vector.broadcast %cst_46 : f32 to vector<8x128xf32>
    %201 = arith.addf %200, %199 : vector<8x128xf32>
    %202 = arith.divf %200, %201 : vector<8x128xf32>
    %203 = arith.select %5, %197, %202 : vector<8x128xi1>, vector<8x128xf32>
    %204 = vector.extract_strided_slice %203 {offsets = [0, 0], sizes = [8, 32], strides = [1, 1]} : vector<8x128xf32> to vector<8x32xf32>
    %205 = vector.extract_strided_slice %203 {offsets = [0, 32], sizes = [8, 32], strides = [1, 1]} : vector<8x128xf32> to vector<8x32xf32>
    %206 = vector.extract_strided_slice %203 {offsets = [0, 64], sizes = [8, 32], strides = [1, 1]} : vector<8x128xf32> to vector<8x32xf32>
    %207 = vector.extract_strided_slice %203 {offsets = [0, 96], sizes = [8, 32], strides = [1, 1]} : vector<8x128xf32> to vector<8x32xf32>
    %208 = arith.mulf %205, %192 : vector<8x32xf32>
    %209 = arith.mulf %204, %206 : vector<8x32xf32>
    %210 = arith.addf %208, %209 : vector<8x32xf32>
    %211 = math.tanh %210 : vector<8x32xf32>
    %212 = arith.mulf %207, %211 : vector<8x32xf32>
    %213 = vector.extract_strided_slice %190 {offsets = [8, 0], sizes = [8, 128], strides = [1, 1]} : vector<64x128xf32> to vector<8x128xf32>
    %214 = arith.truncf %212 : vector<8x32xf32> to vector<8x32xbf16>
    %cst_47 = arith.constant dense<0.000000e+00> : vector<8x128xf32>
    %215 = tpu.matmul %214, %186, %cst_47 {dimension_numbers = #tpu.dot_dimension_numbers<[1], [0], [0], [1], [0, 0, 1, 1], [], []>} : vector<8x32xbf16>, vector<32x128xbf16>, vector<8x128xf32> -> vector<8x128xf32>
    %216 = arith.addf %213, %215 : vector<8x128xf32>
    %217 = math.tanh %216 : vector<8x128xf32>
    %218 = arith.negf %216 : vector<8x128xf32>
    %219 = math.exp %218 : vector<8x128xf32>
    %cst_48 = arith.constant 1.000000e+00 : f32
    %220 = vector.broadcast %cst_48 : f32 to vector<8x128xf32>
    %221 = arith.addf %220, %219 : vector<8x128xf32>
    %222 = arith.divf %220, %221 : vector<8x128xf32>
    %223 = arith.select %5, %217, %222 : vector<8x128xi1>, vector<8x128xf32>
    %224 = vector.extract_strided_slice %223 {offsets = [0, 0], sizes = [8, 32], strides = [1, 1]} : vector<8x128xf32> to vector<8x32xf32>
    %225 = vector.extract_strided_slice %223 {offsets = [0, 32], sizes = [8, 32], strides = [1, 1]} : vector<8x128xf32> to vector<8x32xf32>
    %226 = vector.extract_strided_slice %223 {offsets = [0, 64], sizes = [8, 32], strides = [1, 1]} : vector<8x128xf32> to vector<8x32xf32>
    %227 = vector.extract_strided_slice %223 {offsets = [0, 96], sizes = [8, 32], strides = [1, 1]} : vector<8x128xf32> to vector<8x32xf32>
    %228 = arith.mulf %225, %210 : vector<8x32xf32>
    %229 = arith.mulf %224, %226 : vector<8x32xf32>
    %230 = arith.addf %228, %229 : vector<8x32xf32>
    %231 = math.tanh %230 : vector<8x32xf32>
    %232 = arith.mulf %227, %231 : vector<8x32xf32>
    %233 = vector.extract_strided_slice %190 {offsets = [16, 0], sizes = [8, 128], strides = [1, 1]} : vector<64x128xf32> to vector<8x128xf32>
    %234 = arith.truncf %232 : vector<8x32xf32> to vector<8x32xbf16>
    %cst_49 = arith.constant dense<0.000000e+00> : vector<8x128xf32>
    %235 = tpu.matmul %234, %186, %cst_49 {dimension_numbers = #tpu.dot_dimension_numbers<[1], [0], [0], [1], [0, 0, 1, 1], [], []>} : vector<8x32xbf16>, vector<32x128xbf16>, vector<8x128xf32> -> vector<8x128xf32>
    %236 = arith.addf %233, %235 : vector<8x128xf32>
    %237 = math.tanh %236 : vector<8x128xf32>
    %238 = arith.negf %236 : vector<8x128xf32>
    %239 = math.exp %238 : vector<8x128xf32>
    %cst_50 = arith.constant 1.000000e+00 : f32
    %240 = vector.broadcast %cst_50 : f32 to vector<8x128xf32>
    %241 = arith.addf %240, %239 : vector<8x128xf32>
    %242 = arith.divf %240, %241 : vector<8x128xf32>
    %243 = arith.select %5, %237, %242 : vector<8x128xi1>, vector<8x128xf32>
    %244 = vector.extract_strided_slice %243 {offsets = [0, 0], sizes = [8, 32], strides = [1, 1]} : vector<8x128xf32> to vector<8x32xf32>
    %245 = vector.extract_strided_slice %243 {offsets = [0, 32], sizes = [8, 32], strides = [1, 1]} : vector<8x128xf32> to vector<8x32xf32>
    %246 = vector.extract_strided_slice %243 {offsets = [0, 64], sizes = [8, 32], strides = [1, 1]} : vector<8x128xf32> to vector<8x32xf32>
    %247 = vector.extract_strided_slice %243 {offsets = [0, 96], sizes = [8, 32], strides = [1, 1]} : vector<8x128xf32> to vector<8x32xf32>
    %248 = arith.mulf %245, %230 : vector<8x32xf32>
    %249 = arith.mulf %244, %246 : vector<8x32xf32>
    %250 = arith.addf %248, %249 : vector<8x32xf32>
    %251 = math.tanh %250 : vector<8x32xf32>
    %252 = arith.mulf %247, %251 : vector<8x32xf32>
    %253 = vector.extract_strided_slice %190 {offsets = [24, 0], sizes = [8, 128], strides = [1, 1]} : vector<64x128xf32> to vector<8x128xf32>
    %254 = arith.truncf %252 : vector<8x32xf32> to vector<8x32xbf16>
    %cst_51 = arith.constant dense<0.000000e+00> : vector<8x128xf32>
    %255 = tpu.matmul %254, %186, %cst_51 {dimension_numbers = #tpu.dot_dimension_numbers<[1], [0], [0], [1], [0, 0, 1, 1], [], []>} : vector<8x32xbf16>, vector<32x128xbf16>, vector<8x128xf32> -> vector<8x128xf32>
    %256 = arith.addf %253, %255 : vector<8x128xf32>
    %257 = math.tanh %256 : vector<8x128xf32>
    %258 = arith.negf %256 : vector<8x128xf32>
    %259 = math.exp %258 : vector<8x128xf32>
    %cst_52 = arith.constant 1.000000e+00 : f32
    %260 = vector.broadcast %cst_52 : f32 to vector<8x128xf32>
    %261 = arith.addf %260, %259 : vector<8x128xf32>
    %262 = arith.divf %260, %261 : vector<8x128xf32>
    %263 = arith.select %5, %257, %262 : vector<8x128xi1>, vector<8x128xf32>
    %264 = vector.extract_strided_slice %263 {offsets = [0, 0], sizes = [8, 32], strides = [1, 1]} : vector<8x128xf32> to vector<8x32xf32>
    %265 = vector.extract_strided_slice %263 {offsets = [0, 32], sizes = [8, 32], strides = [1, 1]} : vector<8x128xf32> to vector<8x32xf32>
    %266 = vector.extract_strided_slice %263 {offsets = [0, 64], sizes = [8, 32], strides = [1, 1]} : vector<8x128xf32> to vector<8x32xf32>
    %267 = vector.extract_strided_slice %263 {offsets = [0, 96], sizes = [8, 32], strides = [1, 1]} : vector<8x128xf32> to vector<8x32xf32>
    %268 = arith.mulf %265, %250 : vector<8x32xf32>
    %269 = arith.mulf %264, %266 : vector<8x32xf32>
    %270 = arith.addf %268, %269 : vector<8x32xf32>
    %271 = math.tanh %270 : vector<8x32xf32>
    %272 = arith.mulf %267, %271 : vector<8x32xf32>
    %273 = vector.extract_strided_slice %190 {offsets = [32, 0], sizes = [8, 128], strides = [1, 1]} : vector<64x128xf32> to vector<8x128xf32>
    %274 = arith.truncf %272 : vector<8x32xf32> to vector<8x32xbf16>
    %cst_53 = arith.constant dense<0.000000e+00> : vector<8x128xf32>
    %275 = tpu.matmul %274, %186, %cst_53 {dimension_numbers = #tpu.dot_dimension_numbers<[1], [0], [0], [1], [0, 0, 1, 1], [], []>} : vector<8x32xbf16>, vector<32x128xbf16>, vector<8x128xf32> -> vector<8x128xf32>
    %276 = arith.addf %273, %275 : vector<8x128xf32>
    %277 = math.tanh %276 : vector<8x128xf32>
    %278 = arith.negf %276 : vector<8x128xf32>
    %279 = math.exp %278 : vector<8x128xf32>
    %cst_54 = arith.constant 1.000000e+00 : f32
    %280 = vector.broadcast %cst_54 : f32 to vector<8x128xf32>
    %281 = arith.addf %280, %279 : vector<8x128xf32>
    %282 = arith.divf %280, %281 : vector<8x128xf32>
    %283 = arith.select %5, %277, %282 : vector<8x128xi1>, vector<8x128xf32>
    %284 = vector.extract_strided_slice %283 {offsets = [0, 0], sizes = [8, 32], strides = [1, 1]} : vector<8x128xf32> to vector<8x32xf32>
    %285 = vector.extract_strided_slice %283 {offsets = [0, 32], sizes = [8, 32], strides = [1, 1]} : vector<8x128xf32> to vector<8x32xf32>
    %286 = vector.extract_strided_slice %283 {offsets = [0, 64], sizes = [8, 32], strides = [1, 1]} : vector<8x128xf32> to vector<8x32xf32>
    %287 = vector.extract_strided_slice %283 {offsets = [0, 96], sizes = [8, 32], strides = [1, 1]} : vector<8x128xf32> to vector<8x32xf32>
    %288 = arith.mulf %285, %270 : vector<8x32xf32>
    %289 = arith.mulf %284, %286 : vector<8x32xf32>
    %290 = arith.addf %288, %289 : vector<8x32xf32>
    %291 = math.tanh %290 : vector<8x32xf32>
    %292 = arith.mulf %287, %291 : vector<8x32xf32>
    %293 = vector.extract_strided_slice %190 {offsets = [40, 0], sizes = [8, 128], strides = [1, 1]} : vector<64x128xf32> to vector<8x128xf32>
    %294 = arith.truncf %292 : vector<8x32xf32> to vector<8x32xbf16>
    %cst_55 = arith.constant dense<0.000000e+00> : vector<8x128xf32>
    %295 = tpu.matmul %294, %186, %cst_55 {dimension_numbers = #tpu.dot_dimension_numbers<[1], [0], [0], [1], [0, 0, 1, 1], [], []>} : vector<8x32xbf16>, vector<32x128xbf16>, vector<8x128xf32> -> vector<8x128xf32>
    %296 = arith.addf %293, %295 : vector<8x128xf32>
    %297 = math.tanh %296 : vector<8x128xf32>
    %298 = arith.negf %296 : vector<8x128xf32>
    %299 = math.exp %298 : vector<8x128xf32>
    %cst_56 = arith.constant 1.000000e+00 : f32
    %300 = vector.broadcast %cst_56 : f32 to vector<8x128xf32>
    %301 = arith.addf %300, %299 : vector<8x128xf32>
    %302 = arith.divf %300, %301 : vector<8x128xf32>
    %303 = arith.select %5, %297, %302 : vector<8x128xi1>, vector<8x128xf32>
    %304 = vector.extract_strided_slice %303 {offsets = [0, 0], sizes = [8, 32], strides = [1, 1]} : vector<8x128xf32> to vector<8x32xf32>
    %305 = vector.extract_strided_slice %303 {offsets = [0, 32], sizes = [8, 32], strides = [1, 1]} : vector<8x128xf32> to vector<8x32xf32>
    %306 = vector.extract_strided_slice %303 {offsets = [0, 64], sizes = [8, 32], strides = [1, 1]} : vector<8x128xf32> to vector<8x32xf32>
    %307 = vector.extract_strided_slice %303 {offsets = [0, 96], sizes = [8, 32], strides = [1, 1]} : vector<8x128xf32> to vector<8x32xf32>
    %308 = arith.mulf %305, %290 : vector<8x32xf32>
    %309 = arith.mulf %304, %306 : vector<8x32xf32>
    %310 = arith.addf %308, %309 : vector<8x32xf32>
    %311 = math.tanh %310 : vector<8x32xf32>
    %312 = arith.mulf %307, %311 : vector<8x32xf32>
    %313 = vector.extract_strided_slice %190 {offsets = [48, 0], sizes = [8, 128], strides = [1, 1]} : vector<64x128xf32> to vector<8x128xf32>
    %314 = arith.truncf %312 : vector<8x32xf32> to vector<8x32xbf16>
    %cst_57 = arith.constant dense<0.000000e+00> : vector<8x128xf32>
    %315 = tpu.matmul %314, %186, %cst_57 {dimension_numbers = #tpu.dot_dimension_numbers<[1], [0], [0], [1], [0, 0, 1, 1], [], []>} : vector<8x32xbf16>, vector<32x128xbf16>, vector<8x128xf32> -> vector<8x128xf32>
    %316 = arith.addf %313, %315 : vector<8x128xf32>
    %317 = math.tanh %316 : vector<8x128xf32>
    %318 = arith.negf %316 : vector<8x128xf32>
    %319 = math.exp %318 : vector<8x128xf32>
    %cst_58 = arith.constant 1.000000e+00 : f32
    %320 = vector.broadcast %cst_58 : f32 to vector<8x128xf32>
    %321 = arith.addf %320, %319 : vector<8x128xf32>
    %322 = arith.divf %320, %321 : vector<8x128xf32>
    %323 = arith.select %5, %317, %322 : vector<8x128xi1>, vector<8x128xf32>
    %324 = vector.extract_strided_slice %323 {offsets = [0, 0], sizes = [8, 32], strides = [1, 1]} : vector<8x128xf32> to vector<8x32xf32>
    %325 = vector.extract_strided_slice %323 {offsets = [0, 32], sizes = [8, 32], strides = [1, 1]} : vector<8x128xf32> to vector<8x32xf32>
    %326 = vector.extract_strided_slice %323 {offsets = [0, 64], sizes = [8, 32], strides = [1, 1]} : vector<8x128xf32> to vector<8x32xf32>
    %327 = vector.extract_strided_slice %323 {offsets = [0, 96], sizes = [8, 32], strides = [1, 1]} : vector<8x128xf32> to vector<8x32xf32>
    %328 = arith.mulf %325, %310 : vector<8x32xf32>
    %329 = arith.mulf %324, %326 : vector<8x32xf32>
    %330 = arith.addf %328, %329 : vector<8x32xf32>
    %331 = math.tanh %330 : vector<8x32xf32>
    %332 = arith.mulf %327, %331 : vector<8x32xf32>
    %333 = vector.extract_strided_slice %190 {offsets = [56, 0], sizes = [8, 128], strides = [1, 1]} : vector<64x128xf32> to vector<8x128xf32>
    %334 = arith.truncf %332 : vector<8x32xf32> to vector<8x32xbf16>
    %cst_59 = arith.constant dense<0.000000e+00> : vector<8x128xf32>
    %335 = tpu.matmul %334, %186, %cst_59 {dimension_numbers = #tpu.dot_dimension_numbers<[1], [0], [0], [1], [0, 0, 1, 1], [], []>} : vector<8x32xbf16>, vector<32x128xbf16>, vector<8x128xf32> -> vector<8x128xf32>
    %336 = arith.addf %333, %335 : vector<8x128xf32>
    %337 = math.tanh %336 : vector<8x128xf32>
    %338 = arith.negf %336 : vector<8x128xf32>
    %339 = math.exp %338 : vector<8x128xf32>
    %cst_60 = arith.constant 1.000000e+00 : f32
    %340 = vector.broadcast %cst_60 : f32 to vector<8x128xf32>
    %341 = arith.addf %340, %339 : vector<8x128xf32>
    %342 = arith.divf %340, %341 : vector<8x128xf32>
    %343 = arith.select %5, %337, %342 : vector<8x128xi1>, vector<8x128xf32>
    %344 = vector.extract_strided_slice %343 {offsets = [0, 0], sizes = [8, 32], strides = [1, 1]} : vector<8x128xf32> to vector<8x32xf32>
    %345 = vector.extract_strided_slice %343 {offsets = [0, 32], sizes = [8, 32], strides = [1, 1]} : vector<8x128xf32> to vector<8x32xf32>
    %346 = vector.extract_strided_slice %343 {offsets = [0, 64], sizes = [8, 32], strides = [1, 1]} : vector<8x128xf32> to vector<8x32xf32>
    %347 = vector.extract_strided_slice %343 {offsets = [0, 96], sizes = [8, 32], strides = [1, 1]} : vector<8x128xf32> to vector<8x32xf32>
    %348 = arith.mulf %345, %330 : vector<8x32xf32>
    %349 = arith.mulf %344, %346 : vector<8x32xf32>
    %350 = arith.addf %348, %349 : vector<8x32xf32>
    %351 = math.tanh %350 : vector<8x32xf32>
    %352 = arith.mulf %347, %351 : vector<8x32xf32>
    %353 = arith.truncf %352 : vector<8x32xf32> to vector<8x32xbf16>
    %c0_61 = arith.constant 0 : index
    %c0_62 = arith.constant 0 : index
    %354 = vector.load %arg7[%c0_61, %c0_62] : memref<32x8xbf16, #tpu.memory_space<vmem>>, vector<32x8xbf16>
    %cst_63 = arith.constant dense<0.000000e+00> : vector<8x8xf32>
    %355 = tpu.matmul %353, %354, %cst_63 {dimension_numbers = #tpu.dot_dimension_numbers<[1], [0], [0], [1], [0, 0, 1, 1], [], []>} : vector<8x32xbf16>, vector<32x8xbf16>, vector<8x8xf32> -> vector<8x8xf32>
    %c0_64 = arith.constant 0 : index
    %c0_65 = arith.constant 0 : index
    %356 = vector.load %arg8[%c0_64, %c0_65] : memref<1x8xf32, #tpu.memory_space<vmem>>, vector<1x8xf32>
    %357 = vector.broadcast %356 : vector<1x8xf32> to vector<8x8xf32>
    %358 = arith.addf %355, %357 : vector<8x8xf32>
    %c0_66 = arith.constant 0 : index
    %c0_67 = arith.constant 0 : index
    %359 = vector.load %arg9[%c0_66, %c0_67] : memref<8x8xf32, #tpu.memory_space<vmem>>, vector<8x8xf32>
    tpu.vector_store %arg9[%c0_66, %c0_67], %358 {strides = array<i32>} : memref<8x8xf32, #tpu.memory_space<vmem>>, vector<8x8xf32>,
    return
  }
}

</mosaic_0001>

<bundles_post_ra>
// kernel: tpu_custom_call.1
= control target key start
LH: loop header
LB: loop body
LE: loop exit
PB: predicated region body
PF: predicated region fallthrough
CT: control target
= control target key end

     0   :  { %v2034_v1 = vmov 0.0   ;;  %vm86_vm0 = vcmask 130048   ;;  %vm2035_vm1 = vmmov 0   ;;  %v2036_v6 = vmov 0   ;;  %s2496_s0 = inlined_call_operand.vmem [shape: bf16[64,16], index: 0, kind: input, shape index: {}]   ;;  %s2497_s1 = inlined_call_operand.vmem [shape: bf16[16,128], index: 1, kind: input, shape index: {}]   ;;  %s2498_s2 = inlined_call_operand.vmem [shape: bf16[32,128], index: 2, kind: input, shape index: {}]   ;;  %s2499_s3 = inlined_call_operand.vmem [shape: f32[1,128], index: 3, kind: input, shape index: {}]   ;;  %s2500_s4 = inlined_call_operand.vmem [shape: bf16[32,128], index: 4, kind: input, shape index: {}]   ;;  %s2501_s5 = inlined_call_operand.vmem [shape: bf16[32,128], index: 5, kind: input, shape index: {}]   ;;  %s2502_s6 = inlined_call_operand.vmem [shape: f32[1,128], index: 6, kind: input, shape index: {}]   ;;  %s2503_s7 = inlined_call_operand.vmem [shape: bf16[32,8], index: 7, kind: input, shape index: {}]   ;;  %s2504_s8 = inlined_call_operand.vmem [shape: f32[1,8], index: 8, kind: input, shape index: {}]   ;;  %s2505_s9 = inlined_call_operand.hbm [shape: f32[8,8], index: 9, kind: output, shape index: {}]  }
   0x1   :  { %v1869_v0 = vld [vmem:[%s2497_s1] sm:$0xff]   ;;  %1715 = vmatprep.subr.bf16.mxu1 %v2034_v1  ;;  %v1872_v4 = vld [vmem:[%s2496_s0 + $0x8] sm:$0xff]   ;;  %1719 = vmatprep.mubr.msk.bf16.mxu1 %vm2035_vm1, %v2034_v1 }
   0x2   :  { %v2097_v2 = vld [vmem:[%s2498_s2] sm:$0xff]   ;;  %1705 = vmatprep.subr.bf16.mxu0 %v1869_v0  ;;  %v2111_v5 = vld [vmem:[%s2498_s2 + $0x8] sm:$0xff]  }
   0x3   :  { %v1871_v3 = vld [vmem:[%s2496_s0] sm:$0xff]   ;;  %1716 = vmatpush3.bf16.msra.mxu1 %v2097_v2  ;;  %1706 = vmatpush3.bf16.msra.mxu0 %v1869_v0 }
   0x4   :  { %1707 = vmatprep.mubr.msk.bf16.mxu0 %vm86_vm0, %v1871_v3  ;;  %1717 = vmatprep.subr.bf16.mxu1 %v2034_v1 }
   0x5   :  { %1731 = vmatprep.subr.bf16.mxu0 %v2034_v1 }
   0x6   :  { %1708 = vmatmul.mubr.msk.bf16.vlgmr.msra.gmra.mrb[0].mxu0 %vm86_vm0, %v1872_v4 }
   0x7   :  { %1718 = vmatpush3.bf16.msra.mxu1 %v2111_v5  ;;  %1732 = vmatpush3.bf16.msra.mxu0 %v2097_v2 }
   0x8   :  { %1723 = vmatprep.subr.bf16.mxu1 %v2034_v1  ;;  %1733 = vmatprep.subr.bf16.mxu0 %v2034_v1 }
   0xa   :  { %1720 = vmatmul.mubr.bf16.vlgmr.msra.gmra.mrb[0].mxu1 %v2036_v6 }
   0xb   :  { %14 = vsyncpa [#allocation4], 0  ;;  %1724 = vmatpush3.bf16.msra.mxu1 %v2097_v2  ;;  %1727 = vmatprep.mubr.msk.bf16.mxu1 %vm2035_vm1, %v2034_v1  ;;  %v2133_v7 = vld [vmem:[%s2499_s3] ss:$0 sm:$0xff]  ;;  %v34_v20 = vlaneseq  ;;  %s2037_s3 = smov 64   ;;  %s2038_s19 = smov 32  }
   0xc   :  { %1725 = vmatprep.subr.bf16.mxu1 %v2034_v1  ;;  %1734 = vmatpush3.bf16.msra.mxu0 %v2111_v5  ;;  %vm176_vm5 = vcmask 261120   ;;  %v1874_v54 = vld [vmem:[%s2496_s0 + $0x10] sm:$0xff]   ;;  %v1875_v55 = vld [vmem:[%s2496_s0 + $0x18] sm:$0xff]   ;;  %v1881_v23 = vld [vmem:[%s2503_s7 + $0x8] sm:$0xff]   ;;  %s2039_s15 = smov [#allocation3]   ;;  %vm1572_vm6 = vcmask 64512  }
   0xd   :  { %1747 = vmatprep.subr.bf16.mxu0 %v2034_v1  ;;  %v35_v22 = vand.u32 127, %v34_v20  ;;  %1711 = vmatprep.mubr.msk.bf16.mxu0 %vm86_vm0, %v1874_v54 }
   0xe   :  { %1712 = vmatmul.mubr.msk.bf16.gmra.mrb[4].mxu0 %vm86_vm0, %v1875_v55 }
   0xf   :  { %1726 = vmatpush3.bf16.msra.mxu1 %v2111_v5  ;;  %vm36_vm2 = vcmp.ge.s32.totalorder %v35_v22, 64  ;;  %vm37_vm3 = vcmp.lt.s32.totalorder %v35_v22, 96  ;;  %1735 = vmatprep.mubr.msk.bf16.mxu0 %vm2035_vm1, %v2034_v1 }
  0x10   :  { %1739 = vmatprep.subr.bf16.mxu1 %v2034_v1  ;;  %vm2140_vm4 = vmand %vm36_vm2, %vm37_vm3 }
  0xd9   :  { %v2135_v8 = vpop.f32.mrb[0].mxu0 }
  0xda   :  { %v133_v9 = vpop.f32.mrb[1].mxu0  ;;  %v142_v3 = vadd.f32 %v2135_v8, %v2133_v7 }
  0xdb   :  { %v134_v10 = vadd.f32 %v2133_v7, %v133_v9  ;;  %v2138_v11 = vpop.f32.mrb[2].mxu0 }
  0xdc   :  { %v136_v12 = vpop.f32.mrb[3].mxu0 }
  0xdd   :  { %v214_v13 = vpop.f32.mrb[0].mxu1  ;;  %v137_v37 = vadd.f32 %v2133_v7, %v136_v12 }
  0xde   :  { %v220_v14 = vadd.f32 %v214_v13, %v134_v10  ;;  %v1721_v15 = vpop.f32.mrb[1].mxu1 }
  0xdf   :  { %v217_v16 = vpop.f32.mrb[2].mxu1 }
  0xe0   :  { %v1600_v17 = vmul.f32 -1.442695, %v220_v14  ;;  %v1722_v18 = vpop.f32.mrb[3].mxu1 }
  0xe1   :  { %v2182_v60 = vpop.f32.mrb[4].mxu0 }
  0xe2   :  { %1882 = vpow2.f32 %v1600_v17  ;;  %v2184_v61 = vpop.f32.mrb[5].mxu0 }
  0xe3   :  { %1884 = vtanh.f32 %v220_v14  ;;  %v2186_v62 = vpop.f32.mrb[6].mxu0 }
  0xe4   :  { %v2188_v63 = vpop.f32.mrb[7].mxu0 }
  0xec   :  { %v1883_v19 = vpop.eup %1882 }
  0xed   :  { %v225_v21 = vadd.f32 1.0, %v1883_v19  ;;  %v1885_v24 = vpop.eup %1884 }
  0xef   :  { %1886 = vrcp.f32 %v225_v21 }
  0xf9   :  { %v1887_v25 = vpop.eup %1886 }
  0xfa   :  { %v228_v26 = vsel %vm2140_vm4, %v1885_v24, %v1887_v25 }
  0xfb   :  { %231 = vrot.lane.b32.xlu0 %v228_v26, %s2037_s3  ;;  %v229_v29 = vmul.f32 0.0, %v228_v26 }
 0x16d   :  { %v232_v27 = vpop.permute.xlu0 %231 }
 0x16e   :  { %v234_v28 = vmul.f32 %v232_v27, %v228_v26 }
 0x170   :  { %236 = vrot.lane.b32.xlu0 %v234_v28, %s2038_s19 }
 0x1e2   :  { %v237_v30 = vpop.permute.xlu0 %236 }
 0x1e3   :  { %v239_v31 = vadd.f32 %v237_v30, %v229_v29  ;;  %v145_v30 = vadd.f32 %v2138_v11, %v2133_v7 }
 0x1e5   :  { %1888 = vtanh.f32 %v239_v31 }
 0x1ef   :  { %v1889_v32 = vpop.eup %1888 }
 0x1f0   :  { %242 = vrot.lane.b32.xlu1 %v1889_v32, %s2037_s3 }
 0x262   :  { %v243_v33 = vpop.permute.xlu1 %242 }
 0x263   :  { %v2149_v34 = vmul.f32 %v243_v33, %v228_v26 }
 0x265   :  { %v251_v35 = vpack.c.bf16 %v2149_v34, %v2149_v34 }
 0x267   :  { %253 = vrot.lane.b32.xlu1 %v251_v35, %s2038_s19 }
 0x2d9   :  { %v254_v36 = vpop.permute.xlu1 %253 }
 0x2da   :  { %1728 = vmatmul.mubr.msk.bf16.vlgmr.msra.gmra.mrb[4].mxu1 %vm176_vm5, %v254_v36 }
 0x2db   :  { %1740 = vmatpush3.bf16.msra.mxu1 %v2097_v2  ;;  %1743 = vmatprep.mubr.msk.bf16.mxu1 %vm2035_vm1, %v2034_v1 }
 0x2dc   :  { %1741 = vmatprep.subr.bf16.mxu1 %v2034_v1 }
 0x2df   :  { %1742 = vmatpush3.bf16.msra.mxu1 %v2111_v5 }
 0x2e0   :  { %1755 = vmatprep.subr.bf16.mxu1 %v2034_v1 }
 0x3ad   :  { %v292_v38 = vpop.f32.mrb[4].mxu1 }
 0x3ae   :  { %v298_v39 = vadd.f32 %v292_v38, %v137_v37  ;;  %v1729_v40 = vpop.f32.mrb[5].mxu1 }
 0x3af   :  { %v295_v41 = vpop.f32.mrb[6].mxu1 }
 0x3b0   :  { %v1602_v42 = vmul.f32 -1.442695, %v298_v39  ;;  %v1730_v43 = vpop.f32.mrb[7].mxu1 }
 0x3b2   :  { %1890 = vpow2.f32 %v1602_v42 }
 0x3b3   :  { %1892 = vtanh.f32 %v298_v39 }
 0x3bc   :  { %v1891_v44 = vpop.eup %1890 }
 0x3bd   :  { %v303_v45 = vadd.f32 1.0, %v1891_v44  ;;  %v1893_v46 = vpop.eup %1892 }
 0x3bf   :  { %1894 = vrcp.f32 %v303_v45 }
 0x3c9   :  { %v1895_v47 = vpop.eup %1894 }
 0x3ca   :  { %v306_v48 = vsel %vm2140_vm4, %v1893_v46, %v1895_v47 }
 0x3cb   :  { %309 = vrot.lane.b32.xlu0 %v306_v48, %s2037_s3  ;;  %v307_v51 = vmul.f32 %v306_v48, %v239_v31 }
 0x43d   :  { %v310_v49 = vpop.permute.xlu0 %309 }
 0x43e   :  { %v312_v50 = vmul.f32 %v310_v49, %v306_v48 }
 0x440   :  { %314 = vrot.lane.b32.xlu1 %v312_v50, %s2038_s19 }
 0x4b2   :  { %v315_v52 = vpop.permute.xlu1 %314 }
 0x4b3   :  { %v317_v53 = vadd.f32 %v315_v52, %v307_v51  ;;  %v150_v52 = vadd.f32 %v2133_v7, %v2184_v61 }
 0x4b5   :  { %1896 = vtanh.f32 %v317_v53 }
 0x4bf   :  { %v1897_v56 = vpop.eup %1896 }
 0x4c0   :  { %320 = vrot.lane.b32.xlu0 %v1897_v56, %s2037_s3 }
 0x532   :  { %v321_v57 = vpop.permute.xlu0 %320 }
 0x533   :  { %v2177_v58 = vmul.f32 %v321_v57, %v306_v48 }
 0x535   :  { %v329_v59 = vpack.c.bf16 %v2177_v58, %v2177_v58 }
 0x537   :  { %331 = vrot.lane.b32.xlu1 %v329_v59, %s2038_s19 }
 0x5a9   :  { %v332_v0 = vpop.permute.xlu1 %331 }
 0x5aa   :  { %1736 = vmatmul.mubr.msk.bf16.vlgmr.msra.gmra.mrb[8].mxu0 %vm176_vm5, %v332_v0 }
 0x5ab   :  { %1748 = vmatpush3.bf16.msra.mxu0 %v2097_v2  ;;  %1751 = vmatprep.mubr.msk.bf16.mxu0 %vm2035_vm1, %v2034_v1 }
 0x5ac   :  { %1749 = vmatprep.subr.bf16.mxu0 %v2034_v1 }
 0x5af   :  { %1750 = vmatpush3.bf16.msra.mxu0 %v2111_v5 }
 0x5b0   :  { %1763 = vmatprep.subr.bf16.mxu0 %v2034_v1 }
 0x67d   :  { %v370_v4 = vpop.f32.mrb[8].mxu0 }
 0x67e   :  { %v376_v9 = vadd.f32 %v370_v4, %v142_v3  ;;  %v1737_v10 = vpop.f32.mrb[9].mxu0 }
 0x67f   :  { %v373_v12 = vpop.f32.mrb[10].mxu0 }
 0x680   :  { %v1604_v13 = vmul.f32 -1.442695, %v376_v9  ;;  %v1738_v14 = vpop.f32.mrb[11].mxu0 }
 0x682   :  { %1898 = vpow2.f32 %v1604_v13 }
 0x683   :  { %1900 = vtanh.f32 %v376_v9 }
 0x68c   :  { %v1899_v15 = vpop.eup %1898 }
 0x68d   :  { %v381_v16 = vadd.f32 1.0, %v1899_v15  ;;  %v1901_v17 = vpop.eup %1900 }
 0x68f   :  { %1902 = vrcp.f32 %v381_v16 }
 0x699   :  { %v1903_v18 = vpop.eup %1902 }
 0x69a   :  { %v384_v19 = vsel %vm2140_vm4, %v1901_v17, %v1903_v18 }
 0x69b   :  { %387 = vrot.lane.b32.xlu0 %v384_v19, %s2037_s3  ;;  %v385_v21 = vmul.f32 %v384_v19, %v317_v53 }
 0x70d   :  { %v388_v20 = vpop.permute.xlu0 %387 }
 0x70e   :  { %v390_v8 = vmul.f32 %v388_v20, %v384_v19 }
 0x710   :  { %392 = vrot.lane.b32.xlu1 %v390_v8, %s2038_s19  ;;  %v153_v8 = vadd.f32 %v2133_v7, %v2188_v63 }
 0x782   :  { %v393_v22 = vpop.permute.xlu1 %392 }
 0x783   :  { %v395_v24 = vadd.f32 %v393_v22, %v385_v21 }
 0x785   :  { %1904 = vtanh.f32 %v395_v24 }
 0x78f   :  { %v1905_v25 = vpop.eup %1904 }
 0x790   :  { %398 = vrot.lane.b32.xlu0 %v1905_v25, %s2037_s3 }
 0x802   :  { %v399_v26 = vpop.permute.xlu0 %398 }
 0x803   :  { %v2204_v27 = vmul.f32 %v399_v26, %v384_v19 }
 0x805   :  { %v407_v28 = vpack.c.bf16 %v2204_v27, %v2204_v27 }
 0x807   :  { %409 = vrot.lane.b32.xlu1 %v407_v28, %s2038_s19 }
 0x879   :  { %v410_v29 = vpop.permute.xlu1 %409 }
 0x87a   :  { %1744 = vmatmul.mubr.msk.bf16.vlgmr.msra.gmra.mrb[8].mxu1 %vm176_vm5, %v410_v29 }
 0x87b   :  { %1756 = vmatpush3.bf16.msra.mxu1 %v2097_v2  ;;  %1759 = vmatprep.mubr.msk.bf16.mxu1 %vm2035_vm1, %v2034_v1 }
 0x87c   :  { %1757 = vmatprep.subr.bf16.mxu1 %v2034_v1 }
 0x87f   :  { %1758 = vmatpush3.bf16.msra.mxu1 %v2111_v5 }
 0x880   :  { %1771 = vmatprep.subr.bf16.mxu1 %v2034_v1 }
 0x94d   :  { %v448_v31 = vpop.f32.mrb[8].mxu1 }
 0x94e   :  { %v454_v32 = vadd.f32 %v448_v31, %v145_v30  ;;  %v1745_v33 = vpop.f32.mrb[9].mxu1 }
 0x94f   :  { %v451_v35 = vpop.f32.mrb[10].mxu1 }
 0x950   :  { %v1606_v36 = vmul.f32 -1.442695, %v454_v32  ;;  %v1746_v37 = vpop.f32.mrb[11].mxu1 }
 0x952   :  { %1906 = vpow2.f32 %v1606_v36 }
 0x953   :  { %1908 = vtanh.f32 %v454_v32 }
 0x95c   :  { %v1907_v38 = vpop.eup %1906 }
 0x95d   :  { %v459_v39 = vadd.f32 1.0, %v1907_v38  ;;  %v1909_v40 = vpop.eup %1908 }
 0x95f   :  { %1910 = vrcp.f32 %v459_v39 }
 0x969   :  { %v1911_v41 = vpop.eup %1910 }
 0x96a   :  { %v462_v42 = vsel %vm2140_vm4, %v1909_v40, %v1911_v41 }
 0x96b   :  { %465 = vrot.lane.b32.xlu0 %v462_v42, %s2037_s3  ;;  %v463_v44 = vmul.f32 %v462_v42, %v395_v24 }
 0x9dd   :  { %v466_v43 = vpop.permute.xlu0 %465 }
 0x9de   :  { %v468_v11 = vmul.f32 %v466_v43, %v462_v42 }
 0x9e0   :  { %470 = vrot.lane.b32.xlu1 %v468_v11, %s2038_s19 }
 0xa52   :  { %v471_v45 = vpop.permute.xlu1 %470 }
 0xa53   :  { %v473_v46 = vadd.f32 %v471_v45, %v463_v44 }
 0xa55   :  { %1912 = vtanh.f32 %v473_v46 }
 0xa5f   :  { %v1913_v47 = vpop.eup %1912 }
 0xa60   :  { %476 = vrot.lane.b32.xlu0 %v1913_v47, %s2037_s3 }
 0xad2   :  { %v477_v48 = vpop.permute.xlu0 %476 }
 0xad3   :  { %v2223_v49 = vmul.f32 %v477_v48, %v462_v42  ;;  %v158_v42 = vadd.f32 %v2182_v60, %v2133_v7 }
 0xad5   :  { %v485_v50 = vpack.c.bf16 %v2223_v49, %v2223_v49 }
 0xad7   :  { %487 = vrot.lane.b32.xlu1 %v485_v50, %s2038_s19 }
 0xb49   :  { %v488_v51 = vpop.permute.xlu1 %487 }
 0xb4a   :  { %1752 = vmatmul.mubr.msk.bf16.vlgmr.msra.gmra.mrb[12].mxu0 %vm176_vm5, %v488_v51 }
 0xb4b   :  { %1764 = vmatpush3.bf16.msra.mxu0 %v2097_v2  ;;  %1767 = vmatprep.mubr.msk.bf16.mxu0 %vm2035_vm1, %v2034_v1 }
 0xb4c   :  { %1765 = vmatprep.subr.bf16.mxu0 %v2034_v1 }
 0xb4f   :  { %1766 = vmatpush3.bf16.msra.mxu0 %v2111_v5 }
 0xc1d   :  { %v526_v53 = vpop.f32.mrb[12].mxu0 }
 0xc1e   :  { %v532_v54 = vadd.f32 %v526_v53, %v150_v52  ;;  %v1753_v55 = vpop.f32.mrb[13].mxu0 }
 0xc1f   :  { %v529_v56 = vpop.f32.mrb[14].mxu0 }
 0xc20   :  { %v1608_v57 = vmul.f32 -1.442695, %v532_v54  ;;  %v1754_v59 = vpop.f32.mrb[15].mxu0 }
 0xc22   :  { %1914 = vpow2.f32 %v1608_v57 }
 0xc23   :  { %1916 = vtanh.f32 %v532_v54 }
 0xc2c   :  { %v1915_v0 = vpop.eup %1914 }
 0xc2d   :  { %v537_v3 = vadd.f32 1.0, %v1915_v0  ;;  %v1917_v4 = vpop.eup %1916 }
 0xc2f   :  { %1918 = vrcp.f32 %v537_v3  ;;  %v1876_v3 = vld [vmem:[%s2500_s4] sm:$0xff]  }
 0xc30   :  { %1779 = vmatprep.subr.bf16.mxu0 %v1876_v3 }
 0xc39   :  { %v1919_v9 = vpop.eup %1918 }
 0xc3a   :  { %v540_v10 = vsel %vm2140_vm4, %v1917_v4, %v1919_v9 }
 0xc3b   :  { %543 = vrot.lane.b32.xlu0 %v540_v10, %s2037_s3  ;;  %v541_v13 = vmul.f32 %v540_v10, %v473_v46 }
 0xcad   :  { %v544_v12 = vpop.permute.xlu0 %543 }
 0xcae   :  { %v546_v61 = vmul.f32 %v544_v12, %v540_v10 }
 0xcb0   :  { %548 = vrot.lane.b32.xlu1 %v546_v61, %s2038_s19 }
 0xd22   :  { %v549_v14 = vpop.permute.xlu1 %548 }
 0xd23   :  { %v551_v15 = vadd.f32 %v549_v14, %v541_v13 }
 0xd25   :  { %1920 = vtanh.f32 %v551_v15 }
 0xd2f   :  { %v1921_v16 = vpop.eup %1920 }
 0xd30   :  { %554 = vrot.lane.b32.xlu0 %v1921_v16, %s2037_s3 }
 0xda2   :  { %v555_v17 = vpop.permute.xlu0 %554 }
 0xda3   :  { %v2241_v18 = vmul.f32 %v555_v17, %v540_v10  ;;  %v2304_v17 = vld [vmem:[%s2501_s5] sm:$0xff]  }
 0xda5   :  { %v563_v19 = vpack.c.bf16 %v2241_v18, %v2241_v18 }
 0xda7   :  { %565 = vrot.lane.b32.xlu1 %v563_v19, %s2038_s19  ;;  %v2312_v19 = vld [vmem:[%s2501_s5 + $0x8] sm:$0xff]  }
 0xe19   :  { %v566_v20 = vpop.permute.xlu1 %565 }
 0xe1a   :  { %1760 = vmatmul.mubr.msk.bf16.vlgmr.msra.gmra.mrb[12].mxu1 %vm176_vm5, %v566_v20 }
 0xe1b   :  { %1772 = vmatpush3.bf16.msra.mxu1 %v2097_v2  ;;  %1775 = vmatprep.mubr.msk.bf16.mxu1 %vm2035_vm1, %v2034_v1 }
 0xe1c   :  { %1773 = vmatprep.subr.bf16.mxu1 %v2034_v1 }
 0xe1f   :  { %1774 = vmatpush3.bf16.msra.mxu1 %v2111_v5 }
 0xe20   :  { %1791 = vmatprep.subr.bf16.mxu1 %v2034_v1 }
 0xeed   :  { %v604_v21 = vpop.f32.mrb[12].mxu1 }
 0xeee   :  { %v610_v22 = vadd.f32 %v604_v21, %v153_v8  ;;  %v1761_v24 = vpop.f32.mrb[13].mxu1 }
 0xeef   :  { %v607_v25 = vpop.f32.mrb[14].mxu1 }
 0xef0   :  { %v1610_v26 = vmul.f32 -1.442695, %v610_v22  ;;  %v1762_v28 = vpop.f32.mrb[15].mxu1 }
 0xef2   :  { %1922 = vpow2.f32 %v1610_v26 }
 0xef3   :  { %1924 = vtanh.f32 %v610_v22 }
 0xefc   :  { %v1923_v2 = vpop.eup %1922 }
 0xefd   :  { %v615_v29 = vadd.f32 1.0, %v1923_v2  ;;  %v1925_v30 = vpop.eup %1924 }
 0xeff   :  { %1926 = vrcp.f32 %v615_v29 }
 0xf09   :  { %v1927_v31 = vpop.eup %1926 }
 0xf0a   :  { %v618_v5 = vsel %vm2140_vm4, %v1925_v30, %v1927_v31  ;;  %v2341_v30 = vld [vmem:[%s2502_s6] ss:$0 sm:$0xff] }
 0xf0b   :  { %621 = vrot.lane.b32.xlu0 %v618_v5, %s2037_s3  ;;  %v619_v33 = vmul.f32 %v618_v5, %v551_v15 }
 0xf7d   :  { %v622_v32 = vpop.permute.xlu0 %621 }
 0xf7e   :  { %v624_v63 = vmul.f32 %v622_v32, %v618_v5 }
 0xf80   :  { %626 = vrot.lane.b32.xlu1 %v624_v63, %s2038_s19 }
 0xff2   :  { %v627_v35 = vpop.permute.xlu1 %626 }
 0xff3   :  { %v629_v36 = vadd.f32 %v627_v35, %v619_v33 }
 0xff5   :  { %1928 = vtanh.f32 %v629_v36 }
 0xfff   :  { %v1929_v37 = vpop.eup %1928 }
0x1000   :  { %632 = vrot.lane.b32.xlu0 %v1929_v37, %s2037_s3 }
0x1072   :  { %v633_v38 = vpop.permute.xlu0 %632 }
0x1073   :  { %v2260_v39 = vmul.f32 %v633_v38, %v618_v5 }
0x1075   :  { %v641_v40 = vpack.c.bf16 %v2260_v39, %v2260_v39 }
0x1077   :  { %643 = vrot.lane.b32.xlu1 %v641_v40, %s2038_s19 }
0x10e9   :  { %v644_v41 = vpop.permute.xlu1 %643 }
0x10ea   :  { %1768 = vmatmul.mubr.msk.bf16.vlgmr.msra.gmra.mrb[16].mxu0 %vm176_vm5, %v644_v41 }
0x10eb   :  { %1780 = vmatpush3.bf16.msra.mxu0 %v1876_v3 }
0x11bd   :  { %v682_v43 = vpop.f32.mrb[16].mxu0 }
0x11be   :  { %v688_v11 = vadd.f32 %v682_v43, %v158_v42  ;;  %v1769_v44 = vpop.f32.mrb[17].mxu0 }
0x11bf   :  { %v685_v45 = vpop.f32.mrb[18].mxu0 }
0x11c0   :  { %v1612_v46 = vmul.f32 -1.442695, %v688_v11  ;;  %v1770_v47 = vpop.f32.mrb[19].mxu0 }
0x11c2   :  { %1930 = vpow2.f32 %v1612_v46 }
0x11c3   :  { %1932 = vtanh.f32 %v688_v11 }
0x11cc   :  { %v1931_v48 = vpop.eup %1930 }
0x11cd   :  { %v693_v50 = vadd.f32 1.0, %v1931_v48  ;;  %v1933_v51 = vpop.eup %1932 }
0x11cf   :  { %1934 = vrcp.f32 %v693_v50 }
0x11d9   :  { %v1935_v52 = vpop.eup %1934 }
0x11da   :  { %v696_v53 = vsel %vm2140_vm4, %v1933_v51, %v1935_v52 }
0x11db   :  { %699 = vrot.lane.b32.xlu0 %v696_v53, %s2037_s3  ;;  %v697_v55 = vmul.f32 %v696_v53, %v629_v36 }
0x124d   :  { %v700_v54 = vpop.permute.xlu0 %699 }
0x124e   :  { %v702_v60 = vmul.f32 %v700_v54, %v696_v53 }
0x1250   :  { %704 = vrot.lane.b32.xlu1 %v702_v60, %s2038_s19 }
0x1254   :  { %247 = vrot.lane.b32.xlu1 %v2149_v34, %s2038_s19  ;;  %v1877_v34 = vld [vmem:[%s2500_s4 + $0x8] sm:$0xff]  }
0x1255   :  { %1781 = vmatprep.subr.bf16.mxu0 %v1877_v34 }
0x1256   :  { %1782 = vmatpush3.bf16.msra.mxu0 %v1877_v34 }
0x1257   :  { %1807 = vmatprep.subr.bf16.mxu0 %v2034_v1 }
0x1258   :  { %403 = vrot.lane.b32.xlu1 %v2204_v27, %s2038_s19 }
0x12c2   :  { %v705_v56 = vpop.permute.xlu1 %704 }
0x12c3   :  { %v2276_v57 = vadd.f32 %v705_v56, %v697_v55 }
0x12c5   :  { %1936 = vtanh.f32 %v2276_v57 }
0x12c6   :  { %v248_v59 = vpop.permute.xlu1 %247 }
0x12c7   :  { %250 = vst.msk [vmem:[#allocation2] sm:$0xff] %vm176_vm5, %v248_v59 }
0x12ca   :  { %v404_v0 = vpop.permute.xlu1 %403 }
0x12cb   :  { %406 = vst.msk [vmem:[#allocation2 + $0x10] sm:$0xff] %vm176_vm5, %v404_v0 }
0x12ce   :  { %v797_v13 = vld [vmem:[#allocation2] sm:$0xff] }
0x12cf   :  { %v1937_v27 = vpop.eup %1936 }
0x12d0   :  { %710 = vrot.lane.b32.xlu0 %v1937_v27, %s2037_s3 }
0x12d4   :  { %325 = vrot.lane.b32.xlu0 %v2177_v58, %s2038_s19 }
0x12d8   :  { %481 = vrot.lane.b32.xlu0 %v2223_v49, %s2038_s19  ;;  %v799_v49 = vld [vmem:[#allocation2 + $0x10] sm:$0xff] }
0x1342   :  { %v711_v4 = vpop.permute.xlu0 %710 }
0x1343   :  { %v2293_v9 = vmul.f32 %v711_v4, %v696_v53 }
0x1345   :  { %v719_v10 = vpack.c.bf16 %v2293_v9, %v2293_v9 }
0x1346   :  { %v326_v12 = vpop.permute.xlu0 %325 }
0x1347   :  { %328 = vst.msk [vmem:[#allocation2 + $0x8] sm:$0xff] %vm176_vm5, %v326_v12  ;;  %721 = vrot.lane.b32.xlu1 %v719_v10, %s2038_s19 }
0x134a   :  { %v482_v61 = vpop.permute.xlu0 %481 }
0x134b   :  { %484 = vst.msk [vmem:[#allocation2 + $0x18] sm:$0xff] %vm176_vm5, %v482_v61 }
0x134e   :  { %v798_v14 = vld [vmem:[#allocation2 + $0x8] sm:$0xff] }
0x134f   :  { %v805_v58 = vpack.c.bf16 %v798_v14, %v797_v13 }
0x1351   :  { %1783 = vmatprep.mubr.msk.bf16.mxu0 %vm176_vm5, %v805_v58 }
0x1352   :  { %v800_v15 = vld [vmem:[#allocation2 + $0x18] sm:$0xff] }
0x1353   :  { %v806_v16 = vpack.c.bf16 %v800_v15, %v799_v49 }
0x1355   :  { %1784 = vmatmul.mubr.msk.bf16.vlgmr.msra.gmra.mrb[20].mxu0 %vm176_vm5, %v806_v16 }
0x1356   :  { %1808 = vmatpush3.bf16.msra.mxu0 %v2304_v17 }
0x1357   :  { %1809 = vmatprep.subr.bf16.mxu0 %v2034_v1 }
0x135a   :  { %1810 = vmatpush3.bf16.msra.mxu0 %v2312_v19 }
0x135b   :  { %1823 = vmatprep.subr.bf16.mxu0 %v2034_v1 }
0x13b9   :  { %v722_v20 = vpop.permute.xlu1 %721 }
0x13ba   :  { %1776 = vmatmul.mubr.msk.bf16.vlgmr.msra.gmra.mrb[16].mxu1 %vm176_vm5, %v722_v20 }
0x13bb   :  { %1792 = vmatpush3.bf16.msra.mxu1 %v2304_v17  ;;  %1795 = vmatprep.mubr.msk.bf16.mxu1 %vm2035_vm1, %v2034_v1 }
0x13bc   :  { %1793 = vmatprep.subr.bf16.mxu1 %v2034_v1 }
0x13bf   :  { %1794 = vmatpush3.bf16.msra.mxu1 %v2312_v19 }
0x13c0   :  { %1799 = vmatprep.subr.bf16.mxu1 %v2034_v1 }
0x13c2   :  { %1796 = vmatmul.mubr.bf16.vlgmr.msra.gmra.mrb[20].mxu1 %v2036_v6  ;;  %v161_v6 = vadd.f32 %v2186_v62, %v2133_v7 }
0x13c3   :  { %1800 = vmatpush3.bf16.msra.mxu1 %v2304_v17  ;;  %1803 = vmatprep.mubr.msk.bf16.mxu1 %vm2035_vm1, %v2034_v1 }
0x13c4   :  { %1801 = vmatprep.subr.bf16.mxu1 %v2034_v1 }
0x13c7   :  { %1802 = vmatpush3.bf16.msra.mxu1 %v2312_v19 }
0x13c8   :  { %1815 = vmatprep.subr.bf16.mxu1 %v2034_v1 }
0x1428   :  { %v2330_v8 = vpop.f32.mrb[20].mxu0 }
0x1429   :  { %v882_v21 = vpop.f32.mrb[21].mxu0 }
0x142a   :  { %v2332_v22 = vpop.f32.mrb[22].mxu0  ;;  %v883_v31 = vadd.f32 %v2341_v30, %v882_v21 }
0x142b   :  { %v2334_v24 = vpop.f32.mrb[23].mxu0 }
0x142c   :  { %v886_v12 = vadd.f32 %v2341_v30, %v2334_v24 }
0x148d   :  { %v760_v25 = vpop.f32.mrb[16].mxu1 }
0x148e   :  { %v766_v26 = vadd.f32 %v760_v25, %v161_v6  ;;  %v1777_v28 = vpop.f32.mrb[17].mxu1 }
0x148f   :  { %v763_v2 = vpop.f32.mrb[18].mxu1 }
0x1490   :  { %v1778_v29 = vpop.f32.mrb[19].mxu1  ;;  %v1614_v43 = vmul.f32 -1.442695, %v766_v26 }
0x1495   :  { %v959_v5 = vpop.f32.mrb[20].mxu1 }
0x1496   :  { %v965_v32 = vadd.f32 %v959_v5, %v883_v31  ;;  %v1797_v63 = vpop.f32.mrb[21].mxu1 }
0x1497   :  { %v962_v33 = vpop.f32.mrb[22].mxu1 }
0x1498   :  { %v1624_v35 = vmul.f32 -1.442695, %v965_v32  ;;  %v1798_v36 = vpop.f32.mrb[23].mxu1 }
0x149a   :  { %1938 = vpow2.f32 %v1624_v35 }
0x149b   :  { %1940 = vtanh.f32 %v965_v32 }
0x14a4   :  { %v1939_v7 = vpop.eup %1938 }
0x14a5   :  { %v970_v62 = vadd.f32 1.0, %v1939_v7  ;;  %v1941_v37 = vpop.eup %1940 }
0x14a7   :  { %1942 = vrcp.f32 %v970_v62 }
0x14a8   :  { %1944 = vpow2.f32 %v1614_v43 }
0x14b1   :  { %v1943_v38 = vpop.eup %1942 }
0x14b2   :  { %v973_v40 = vsel %vm2140_vm4, %v1941_v37, %v1943_v38  ;;  %v1945_v11 = vpop.eup %1944 }
0x14b3   :  { %976 = vrot.lane.b32.xlu0 %v973_v40, %s2037_s3  ;;  %v974_v44 = vmul.f32 0.0, %v973_v40  ;;  %v771_v45 = vadd.f32 1.0, %v1945_v11  ;;  %v891_v11 = vadd.f32 %v2330_v8, %v2341_v30 }
0x1525   :  { %v977_v41 = vpop.permute.xlu0 %976 }
0x1526   :  { %v979_v42 = vmul.f32 %v977_v41, %v973_v40 }
0x1528   :  { %981 = vrot.lane.b32.xlu1 %v979_v42, %s2038_s19 }
0x159a   :  { %v982_v46 = vpop.permute.xlu1 %981 }
0x159b   :  { %v984_v47 = vadd.f32 %v982_v46, %v974_v44 }
0x159d   :  { %1946 = vtanh.f32 %v984_v47 }
0x159e   :  { %1948 = vrcp.f32 %v771_v45 }
0x159f   :  { %1950 = vtanh.f32 %v766_v26 }
0x15a7   :  { %v1947_v48 = vpop.eup %1946 }
0x15a8   :  { %v1949_v50 = vpop.eup %1948  ;;  %987 = vrot.lane.b32.xlu0 %v1947_v48, %s2037_s3 }
0x15a9   :  { %v1951_v51 = vpop.eup %1950 }
0x15aa   :  { %v774_v52 = vsel %vm2140_vm4, %v1951_v51, %v1949_v50 }
0x15ab   :  { %v775_v0 = vmul.f32 %v774_v52, %v2276_v57 }
0x15ac   :  { %777 = vrot.lane.b32.xlu0 %v774_v52, %s2037_s3 }
0x161a   :  { %v988_v53 = vpop.permute.xlu0 %987 }
0x161b   :  { %v990_v54 = vmul.f32 %v988_v53, %v973_v40 }
0x161d   :  { %v991_v60 = vpack.c.bf16 %v990_v54, %v990_v54 }
0x161e   :  { %v778_v55 = vpop.permute.xlu0 %777 }
0x161f   :  { %v780_v56 = vmul.f32 %v778_v55, %v774_v52  ;;  %993 = vrot.lane.b32.xlu1 %v991_v60, %s2038_s19 }
0x1621   :  { %782 = vrot.lane.b32.xlu0 %v780_v56, %s2038_s19 }
0x1691   :  { %v994_v59 = vpop.permute.xlu1 %993 }
0x1692   :  { %1804 = vmatmul.mubr.msk.bf16.vlgmr.msra.gmra.mrb[24].mxu1 %vm176_vm5, %v994_v59 }
0x1693   :  { %v783_v3 = vpop.permute.xlu0 %782  ;;  %1816 = vmatpush3.bf16.msra.mxu1 %v2304_v17  ;;  %1819 = vmatprep.mubr.msk.bf16.mxu1 %vm2035_vm1, %v2034_v1 }
0x1694   :  { %v785_v34 = vadd.f32 %v783_v3, %v775_v0  ;;  %1817 = vmatprep.subr.bf16.mxu1 %v2034_v1 }
0x1696   :  { %1952 = vtanh.f32 %v785_v34 }
0x1697   :  { %1818 = vmatpush3.bf16.msra.mxu1 %v2312_v19 }
0x1698   :  { %1831 = vmatprep.subr.bf16.mxu1 %v2034_v1 }
0x16a0   :  { %v1953_v27 = vpop.eup %1952 }
0x16a1   :  { %788 = vrot.lane.b32.xlu0 %v1953_v27, %s2037_s3 }
0x16a5   :  { %559 = vrot.lane.b32.xlu0 %v2241_v18, %s2038_s19 }
0x16a9   :  { %715 = vrot.lane.b32.xlu0 %v2293_v9, %s2038_s19 }
0x1713   :  { %v789_v57 = vpop.permute.xlu0 %788 }
0x1714   :  { %v791_v29 = vmul.f32 %v789_v57, %v774_v52 }
0x1717   :  { %v560_v4 = vpop.permute.xlu0 %559 }
0x1718   :  { %562 = vst.msk [vmem:[#allocation2 + $0x20] sm:$0xff] %vm176_vm5, %v560_v4 }
0x171b   :  { %v716_v10 = vpop.permute.xlu0 %715 }
0x171c   :  { %718 = vst.msk [vmem:[#allocation2 + $0x30] sm:$0xff] %vm176_vm5, %v716_v10  ;;  %v894_v10 = vadd.f32 %v2332_v22, %v2341_v30 }
0x171f   :  { %v801_v35 = vld [vmem:[#allocation2 + $0x20] sm:$0xff] }
0x1765   :  { %v1032_v61 = vpop.f32.mrb[24].mxu1 }
0x1766   :  { %v1038_v13 = vadd.f32 %v1032_v61, %v886_v12  ;;  %v1805_v14 = vpop.f32.mrb[25].mxu1 }
0x1767   :  { %v1035_v58 = vpop.f32.mrb[26].mxu1 }
0x1768   :  { %v1626_v49 = vmul.f32 -1.442695, %v1038_v13  ;;  %v1806_v15 = vpop.f32.mrb[27].mxu1 }
0x176a   :  { %1954 = vpow2.f32 %v1626_v49 }
0x176b   :  { %1956 = vtanh.f32 %v1038_v13 }
0x1774   :  { %v1955_v18 = vpop.eup %1954 }
0x1775   :  { %v1043_v16 = vadd.f32 1.0, %v1955_v18  ;;  %v1957_v9 = vpop.eup %1956 }
0x1777   :  { %1958 = vrcp.f32 %v1043_v16 }
0x1781   :  { %v1959_v20 = vpop.eup %1958 }
0x1782   :  { %v1046_v21 = vsel %vm2140_vm4, %v1957_v9, %v1959_v20 }
0x1783   :  { %1049 = vrot.lane.b32.xlu1 %v1046_v21, %s2037_s3  ;;  %v1047_v25 = vmul.f32 %v1046_v21, %v984_v47 }
0x17f5   :  { %v1050_v6 = vpop.permute.xlu1 %1049 }
0x17f6   :  { %v1052_v24 = vmul.f32 %v1050_v6, %v1046_v21 }
0x17f8   :  { %1054 = vrot.lane.b32.xlu1 %v1052_v24, %s2038_s19 }
0x186a   :  { %v1055_v26 = vpop.permute.xlu1 %1054 }
0x186b   :  { %v1057_v28 = vadd.f32 %v1055_v26, %v1047_v25 }
0x186d   :  { %1960 = vtanh.f32 %v1057_v28 }
0x1877   :  { %v1961_v2 = vpop.eup %1960 }
0x1878   :  { %1060 = vrot.lane.b32.xlu1 %v1961_v2, %s2037_s3 }
0x187c   :  { %637 = vrot.lane.b32.xlu1 %v2260_v39, %s2038_s19  ;;  %v803_v39 = vld [vmem:[#allocation2 + $0x30] sm:$0xff] }
0x1880   :  { %793 = vrot.lane.b32.xlu1 %v791_v29, %s2038_s19 }
0x18ea   :  { %v1061_v31 = vpop.permute.xlu1 %1060 }
0x18eb   :  { %v1063_v5 = vmul.f32 %v1061_v31, %v1046_v21 }
0x18ed   :  { %v1064_v32 = vpack.c.bf16 %v1063_v5, %v1063_v5 }
0x18ee   :  { %v638_v63 = vpop.permute.xlu1 %637 }
0x18ef   :  { %640 = vst.msk [vmem:[#allocation2 + $0x28] sm:$0xff] %vm176_vm5, %v638_v63  ;;  %1066 = vrot.lane.b32.xlu0 %v1064_v32, %s2038_s19 }
0x18f2   :  { %v794_v33 = vpop.permute.xlu1 %793 }
0x18f3   :  { %796 = vst.msk [vmem:[#allocation2 + $0x38] sm:$0xff] %vm176_vm5, %v794_v33 }
0x18f6   :  { %v802_v36 = vld [vmem:[#allocation2 + $0x28] sm:$0xff] }
0x18f7   :  { %v807_v7 = vpack.c.bf16 %v802_v36, %v801_v35 }
0x18f9   :  { %1787 = vmatprep.mubr.msk.bf16.mxu0 %vm176_vm5, %v807_v7 }
0x18fa   :  { %v804_v62 = vld [vmem:[#allocation2 + $0x38] sm:$0xff] }
0x18fb   :  { %v808_v37 = vpack.c.bf16 %v804_v62, %v803_v39 }
0x18fd   :  { %1788 = vmatmul.mubr.msk.bf16.gmra.mrb[24].mxu0 %vm176_vm5, %v808_v37 }
0x18fe   :  { %1811 = vmatprep.mubr.msk.bf16.mxu0 %vm2035_vm1, %v2034_v1 }
0x1961   :  { %v1067_v38 = vpop.permute.xlu0 %1066 }
0x1962   :  { %1812 = vmatmul.mubr.msk.bf16.vlgmr.msra.gmra.mrb[28].mxu0 %vm176_vm5, %v1067_v38 }
0x1963   :  { %1824 = vmatpush3.bf16.msra.mxu0 %v2304_v17  ;;  %1827 = vmatprep.mubr.msk.bf16.mxu0 %vm2035_vm1, %v2034_v1 }
0x1964   :  { %1825 = vmatprep.subr.bf16.mxu0 %v2034_v1 }
0x1967   :  { %1826 = vmatpush3.bf16.msra.mxu0 %v2312_v19 }
0x1968   :  { %1839 = vmatprep.subr.bf16.mxu0 %v2034_v1 }
0x19d0   :  { %v2393_v40 = vpop.f32.mrb[24].mxu0 }
0x19d1   :  { %v2395_v41 = vpop.f32.mrb[25].mxu0 }
0x19d2   :  { %v2397_v42 = vpop.f32.mrb[26].mxu0  ;;  %v899_v5 = vadd.f32 %v2341_v30, %v2395_v41 }
0x19d3   :  { %v2399_v43 = vpop.f32.mrb[27].mxu0 }
0x1a35   :  { %v1105_v44 = vpop.f32.mrb[28].mxu0 }
0x1a36   :  { %v1111_v45 = vadd.f32 %v1105_v44, %v891_v11  ;;  %v1813_v46 = vpop.f32.mrb[29].mxu0 }
0x1a37   :  { %v1108_v47 = vpop.f32.mrb[30].mxu0 }
0x1a38   :  { %v1628_v48 = vmul.f32 -1.442695, %v1111_v45  ;;  %v1814_v50 = vpop.f32.mrb[31].mxu0 }
0x1a3a   :  { %1962 = vpow2.f32 %v1628_v48 }
0x1a3b   :  { %1964 = vtanh.f32 %v1111_v45 }
0x1a44   :  { %v1963_v51 = vpop.eup %1962 }
0x1a45   :  { %v1116_v52 = vadd.f32 1.0, %v1963_v51  ;;  %v1965_v53 = vpop.eup %1964 }
0x1a47   :  { %1966 = vrcp.f32 %v1116_v52 }
0x1a51   :  { %v1967_v54 = vpop.eup %1966 }
0x1a52   :  { %v1119_v60 = vsel %vm2140_vm4, %v1965_v53, %v1967_v54  ;;  %v902_v54 = vadd.f32 %v2341_v30, %v2399_v43 }
0x1a53   :  { %1122 = vrot.lane.b32.xlu1 %v1119_v60, %s2037_s3  ;;  %v1120_v56 = vmul.f32 %v1119_v60, %v1057_v28 }
0x1ac5   :  { %v1123_v55 = vpop.permute.xlu1 %1122 }
0x1ac6   :  { %v1125_v8 = vmul.f32 %v1123_v55, %v1119_v60 }
0x1ac8   :  { %1127 = vrot.lane.b32.xlu0 %v1125_v8, %s2038_s19 }
0x1b3a   :  { %v1128_v59 = vpop.permute.xlu0 %1127 }
0x1b3b   :  { %v1130_v0 = vadd.f32 %v1128_v59, %v1120_v56 }
0x1b3d   :  { %1968 = vtanh.f32 %v1130_v0 }
0x1b47   :  { %v1969_v3 = vpop.eup %1968 }
0x1b48   :  { %1133 = vrot.lane.b32.xlu1 %v1969_v3, %s2037_s3 }
0x1bba   :  { %v1134_v34 = vpop.permute.xlu1 %1133 }
0x1bbb   :  { %v1136_v27 = vmul.f32 %v1134_v34, %v1119_v60 }
0x1bbd   :  { %v1137_v57 = vpack.c.bf16 %v1136_v27, %v1136_v27 }
0x1bbf   :  { %1139 = vrot.lane.b32.xlu0 %v1137_v57, %s2038_s19 }
0x1c31   :  { %v1140_v4 = vpop.permute.xlu0 %1139 }
0x1c32   :  { %1820 = vmatmul.mubr.msk.bf16.vlgmr.msra.gmra.mrb[28].mxu1 %vm176_vm5, %v1140_v4 }
0x1c33   :  { %1832 = vmatpush3.bf16.msra.mxu1 %v2304_v17  ;;  %1835 = vmatprep.mubr.msk.bf16.mxu1 %vm2035_vm1, %v2034_v1 }
0x1c34   :  { %1833 = vmatprep.subr.bf16.mxu1 %v2034_v1 }
0x1c37   :  { %1834 = vmatpush3.bf16.msra.mxu1 %v2312_v19 }
0x1c38   :  { %1847 = vmatprep.subr.bf16.mxu1 %v2034_v1 }
0x1d05   :  { %v1178_v12 = vpop.f32.mrb[28].mxu1 }
0x1d06   :  { %v1184_v61 = vadd.f32 %v1178_v12, %v894_v10  ;;  %v1821_v13 = vpop.f32.mrb[29].mxu1 }
0x1d07   :  { %v1181_v14 = vpop.f32.mrb[30].mxu1 }
0x1d08   :  { %v1630_v58 = vmul.f32 -1.442695, %v1184_v61  ;;  %v1822_v49 = vpop.f32.mrb[31].mxu1 }
0x1d0a   :  { %1970 = vpow2.f32 %v1630_v58 }
0x1d0b   :  { %1972 = vtanh.f32 %v1184_v61 }
0x1d14   :  { %v1971_v15 = vpop.eup %1970 }
0x1d15   :  { %v1189_v18 = vadd.f32 1.0, %v1971_v15  ;;  %v1973_v16 = vpop.eup %1972  ;;  %v907_v15 = vadd.f32 %v2393_v40, %v2341_v30 }
0x1d17   :  { %1974 = vrcp.f32 %v1189_v18 }
0x1d21   :  { %v1975_v9 = vpop.eup %1974 }
0x1d22   :  { %v1192_v20 = vsel %vm2140_vm4, %v1973_v16, %v1975_v9 }
0x1d23   :  { %1195 = vrot.lane.b32.xlu1 %v1192_v20, %s2037_s3  ;;  %v1193_v6 = vmul.f32 %v1192_v20, %v1130_v0 }
0x1d95   :  { %v1196_v21 = vpop.permute.xlu1 %1195 }
0x1d96   :  { %v1198_v22 = vmul.f32 %v1196_v21, %v1192_v20 }
0x1d98   :  { %1200 = vrot.lane.b32.xlu0 %v1198_v22, %s2038_s19 }
0x1e0a   :  { %v1201_v24 = vpop.permute.xlu0 %1200 }
0x1e0b   :  { %v1203_v25 = vadd.f32 %v1201_v24, %v1193_v6 }
0x1e0d   :  { %1976 = vtanh.f32 %v1203_v25 }
0x1e17   :  { %v1977_v26 = vpop.eup %1976 }
0x1e18   :  { %1206 = vrot.lane.b32.xlu1 %v1977_v26, %s2037_s3 }
0x1e8a   :  { %v1207_v28 = vpop.permute.xlu1 %1206 }
0x1e8b   :  { %v1209_v2 = vmul.f32 %v1207_v28, %v1192_v20 }
0x1e8d   :  { %v1210_v29 = vpack.c.bf16 %v1209_v2, %v1209_v2 }
0x1e8f   :  { %1212 = vrot.lane.b32.xlu0 %v1210_v29, %s2038_s19 }
0x1f01   :  { %v1213_v31 = vpop.permute.xlu0 %1212 }
0x1f02   :  { %1828 = vmatmul.mubr.msk.bf16.vlgmr.msra.gmra.mrb[32].mxu0 %vm176_vm5, %v1213_v31 }
0x1f03   :  { %1840 = vmatpush3.bf16.msra.mxu0 %v2304_v17  ;;  %1843 = vmatprep.mubr.msk.bf16.mxu0 %vm2035_vm1, %v2034_v1 }
0x1f04   :  { %1841 = vmatprep.subr.bf16.mxu0 %v2034_v1 }
0x1f07   :  { %1842 = vmatpush3.bf16.msra.mxu0 %v2312_v19 }
0x1f08   :  { %1855 = vmatprep.subr.bf16.mxu0 %v2034_v1 }
0x1fd5   :  { %v1251_v32 = vpop.f32.mrb[32].mxu0 }
0x1fd6   :  { %v1257_v63 = vadd.f32 %v1251_v32, %v899_v5  ;;  %v1829_v33 = vpop.f32.mrb[33].mxu0 }
0x1fd7   :  { %v1254_v35 = vpop.f32.mrb[34].mxu0 }
0x1fd8   :  { %v1632_v36 = vmul.f32 -1.442695, %v1257_v63  ;;  %v1830_v7 = vpop.f32.mrb[35].mxu0 }
0x1fd9   :  { %v910_v7 = vadd.f32 %v2397_v42, %v2341_v30 }
0x1fda   :  { %1978 = vpow2.f32 %v1632_v36 }
0x1fdb   :  { %1980 = vtanh.f32 %v1257_v63 }
0x1fe4   :  { %v1979_v39 = vpop.eup %1978 }
0x1fe5   :  { %v1262_v62 = vadd.f32 1.0, %v1979_v39  ;;  %v1981_v37 = vpop.eup %1980 }
0x1fe7   :  { %1982 = vrcp.f32 %v1262_v62 }
0x1ff1   :  { %v1983_v38 = vpop.eup %1982 }
0x1ff2   :  { %v1265_v11 = vsel %vm2140_vm4, %v1981_v37, %v1983_v38 }
0x1ff3   :  { %1268 = vrot.lane.b32.xlu1 %v1265_v11, %s2037_s3  ;;  %v1266_v45 = vmul.f32 %v1265_v11, %v1203_v25 }
0x2065   :  { %v1269_v44 = vpop.permute.xlu1 %1268 }
0x2066   :  { %v1271_v41 = vmul.f32 %v1269_v44, %v1265_v11 }
0x2068   :  { %1273 = vrot.lane.b32.xlu0 %v1271_v41, %s2038_s19 }
0x20da   :  { %v1274_v46 = vpop.permute.xlu0 %1273 }
0x20db   :  { %v1276_v47 = vadd.f32 %v1274_v46, %v1266_v45 }
0x20dd   :  { %1984 = vtanh.f32 %v1276_v47 }
0x20e7   :  { %v1985_v48 = vpop.eup %1984 }
0x20e8   :  { %1279 = vrot.lane.b32.xlu1 %v1985_v48, %s2037_s3 }
0x215a   :  { %v1280_v50 = vpop.permute.xlu1 %1279 }
0x215b   :  { %v1282_v51 = vmul.f32 %v1280_v50, %v1265_v11 }
0x215d   :  { %v1283_v52 = vpack.c.bf16 %v1282_v51, %v1282_v51 }
0x215f   :  { %1285 = vrot.lane.b32.xlu0 %v1283_v52, %s2038_s19 }
0x21d1   :  { %v1286_v53 = vpop.permute.xlu0 %1285 }
0x21d2   :  { %1836 = vmatmul.mubr.msk.bf16.vlgmr.msra.gmra.mrb[32].mxu1 %vm176_vm5, %v1286_v53  ;;  %v1880_v53 = vld [vmem:[%s2503_s7] sm:$0xff]   ;;  %s1580_s7 = sshll.u32 %s2039_s15, 4  ;;  %s1581_s7 = int_to_ptr.vmem [resolvable:$true] %s1580_s7 }
0x21d3   :  { %1848 = vmatpush3.bf16.msra.mxu1 %v2304_v17  ;;  %1851 = vmatprep.mubr.msk.bf16.mxu1 %vm2035_vm1, %v2034_v1  ;;  %s2010_s16 = scalar_lea.vmem %s1581_s7, 128  ;;  %p2015_p1 = scmp.lt.s32.totalorder %s1581_s7, %s1581_s7 }
0x21d4   :  { %1849 = vmatprep.subr.bf16.mxu1 %v2034_v1  ;;  %p2011_p0 = scmp.ne.s32.totalorder %s1581_s7, %s2010_s16  ;;  %p2016_p2 = scmp.lt.s32.totalorder %s2010_s16, %s2010_s16 }
0x21d6   :  { %p2017_p3 = por %p2016_p2, %p2015_p1 }
0x21d7   :  { %1850 = vmatpush3.bf16.msra.mxu1 %v2312_v19 }
0x21d8   :  { %p2018_p4 = pnand %p2017_p3, %p2011_p0 }
0x22a5   :  { %v1324_v60 = vpop.f32.mrb[32].mxu1 }
0x22a6   :  { %v1330_v55 = vadd.f32 %v1324_v60, %v902_v54  ;;  %v1837_v8 = vpop.f32.mrb[33].mxu1 }
0x22a7   :  { %v1327_v56 = vpop.f32.mrb[34].mxu1 }
0x22a8   :  { %v1634_v59 = vmul.f32 -1.442695, %v1330_v55  ;;  %v1838_v0 = vpop.f32.mrb[35].mxu1 }
0x22aa   :  { %1986 = vpow2.f32 %v1634_v59  ;;  %v1639_v59 = vld [vmem:[%s2504_s8] ss:$0 sm:$0xff] }
0x22ab   :  { %1988 = vtanh.f32 %v1330_v55 }
0x22b4   :  { %v1987_v3 = vpop.eup %1986 }
0x22b5   :  { %v1335_v34 = vadd.f32 1.0, %v1987_v3  ;;  %v1989_v17 = vpop.eup %1988 }
0x22b7   :  { %1990 = vrcp.f32 %v1335_v34 }
0x22c1   :  { %v1991_v27 = vpop.eup %1990 }
0x22c2   :  { %v1338_v57 = vsel %vm2140_vm4, %v1989_v17, %v1991_v27 }
0x22c3   :  { %1341 = vrot.lane.b32.xlu1 %v1338_v57, %s2037_s3  ;;  %v1339_v4 = vmul.f32 %v1338_v57, %v1276_v47 }
0x2335   :  { %v1342_v19 = vpop.permute.xlu1 %1341 }
0x2336   :  { %v1344_v43 = vmul.f32 %v1342_v19, %v1338_v57 }
0x2338   :  { %1346 = vrot.lane.b32.xlu0 %v1344_v43, %s2038_s19 }
0x23aa   :  { %v1347_v10 = vpop.permute.xlu0 %1346 }
0x23ab   :  { %v1349_v12 = vadd.f32 %v1347_v10, %v1339_v4 }
0x23ad   :  { %1992 = vtanh.f32 %v1349_v12 }
0x23b7   :  { %v1993_v61 = vpop.eup %1992 }
0x23b8   :  { %1352 = vrot.lane.b32.xlu1 %v1993_v61, %s2037_s3 }
0x242a   :  { %v1353_v13 = vpop.permute.xlu1 %1352 }
0x242b   :  { %v1355_v14 = vmul.f32 %v1353_v13, %v1338_v57 }
0x242d   :  { %v1356_v58 = vpack.c.bf16 %v1355_v14, %v1355_v14 }
0x242f   :  { %1358 = vrot.lane.b32.xlu0 %v1356_v58, %s2038_s19 }
0x24a1   :  { %v1359_v49 = vpop.permute.xlu0 %1358 }
0x24a2   :  { %1844 = vmatmul.mubr.msk.bf16.vlgmr.msra.gmra.mrb[36].mxu0 %vm176_vm5, %v1359_v49 }
0x24a3   :  { %1859 = vmatprep.mubr.msk.bf16.mxu0 %vm2035_vm1, %v2034_v1  ;;  %1856 = vmatpush3.bf16.msra.mxu0 %v1880_v53 }
0x24a4   :  { %1857 = vmatprep.subr.bf16.mxu0 %v2034_v1 }
0x24a7   :  { %1858 = vmatpush3.bf16.msra.mxu0 %v1881_v23 }
0x2575   :  { %v1397_v18 = vpop.f32.mrb[36].mxu0 }
0x2576   :  { %v1403_v16 = vadd.f32 %v1397_v18, %v907_v15  ;;  %v1845_v9 = vpop.f32.mrb[37].mxu0 }
0x2577   :  { %v1400_v20 = vpop.f32.mrb[38].mxu0 }
0x2578   :  { %v1636_v21 = vmul.f32 -1.442695, %v1403_v16  ;;  %v1846_v22 = vpop.f32.mrb[39].mxu0 }
0x257a   :  { %1994 = vpow2.f32 %v1636_v21 }
0x257b   :  { %1996 = vtanh.f32 %v1403_v16 }
0x2584   :  { %v1995_v6 = vpop.eup %1994 }
0x2585   :  { %v1408_v24 = vadd.f32 1.0, %v1995_v6  ;;  %v1997_v25 = vpop.eup %1996 }
0x2587   :  { %1998 = vrcp.f32 %v1408_v24 }
0x2591   :  { %v1999_v26 = vpop.eup %1998 }
0x2592   :  { %v1411_v28 = vsel %vm2140_vm4, %v1997_v25, %v1999_v26 }
0x2593   :  { %1414 = vrot.lane.b32.xlu1 %v1411_v28, %s2037_s3  ;;  %v1412_v29 = vmul.f32 %v1411_v28, %v1349_v12 }
0x2605   :  { %v1415_v2 = vpop.permute.xlu1 %1414 }
0x2606   :  { %v1417_v40 = vmul.f32 %v1415_v2, %v1411_v28 }
0x2608   :  { %1419 = vrot.lane.b32.xlu0 %v1417_v40, %s2038_s19 }
0x267a   :  { %v1420_v31 = vpop.permute.xlu0 %1419 }
0x267b   :  { %v1422_v5 = vadd.f32 %v1420_v31, %v1412_v29 }
0x267d   :  { %2000 = vtanh.f32 %v1422_v5 }
0x2687   :  { %v2001_v32 = vpop.eup %2000 }
0x2688   :  { %1425 = vrot.lane.b32.xlu1 %v2001_v32, %s2037_s3 }
0x26fa   :  { %v1426_v63 = vpop.permute.xlu1 %1425 }
0x26fb   :  { %v1428_v33 = vmul.f32 %v1426_v63, %v1411_v28 }
0x26fd   :  { %v1429_v35 = vpack.c.bf16 %v1428_v33, %v1428_v33 }
0x26ff   :  { %1431 = vrot.lane.b32.xlu0 %v1429_v35, %s2038_s19 }
0x2771   :  { %v1432_v36 = vpop.permute.xlu0 %1431 }
0x2772   :  { %1852 = vmatmul.mubr.msk.bf16.vlgmr.msra.gmra.mrb[36].mxu1 %vm176_vm5, %v1432_v36 }
0x2845   :  { %v1470_v39 = vpop.f32.mrb[36].mxu1 }
0x2846   :  { %v1476_v62 = vadd.f32 %v1470_v39, %v910_v7  ;;  %v1853_v37 = vpop.f32.mrb[37].mxu1 }
0x2847   :  { %v1473_v38 = vpop.f32.mrb[38].mxu1 }
0x2848   :  { %v1638_v11 = vmul.f32 -1.442695, %v1476_v62  ;;  %v1854_v44 = vpop.f32.mrb[39].mxu1 }
0x284a   :  { %2002 = vpow2.f32 %v1638_v11 }
0x284b   :  { %2004 = vtanh.f32 %v1476_v62 }
0x2854   :  { %v2003_v41 = vpop.eup %2002 }
0x2855   :  { %v1481_v45 = vadd.f32 1.0, %v2003_v41  ;;  %v2005_v46 = vpop.eup %2004 }
0x2857   :  { %2006 = vrcp.f32 %v1481_v45 }
0x2861   :  { %v2007_v47 = vpop.eup %2006 }
0x2862   :  { %v1484_v48 = vsel %vm2140_vm4, %v2005_v46, %v2007_v47 }
0x2863   :  { %1487 = vrot.lane.b32.xlu1 %v1484_v48, %s2037_s3  ;;  %v1485_v42 = vmul.f32 %v1484_v48, %v1422_v5 }
0x28d5   :  { %v1488_v50 = vpop.permute.xlu1 %1487 }
0x28d6   :  { %v1490_v30 = vmul.f32 %v1488_v50, %v1484_v48 }
0x28d8   :  { %1492 = vrot.lane.b32.xlu0 %v1490_v30, %s2038_s19 }
0x294a   :  { %v1493_v51 = vpop.permute.xlu0 %1492 }
0x294b   :  { %v1495_v52 = vadd.f32 %v1493_v51, %v1485_v42 }
0x294d   :  { %2008 = vtanh.f32 %v1495_v52 }
0x2957   :  { %v2009_v54 = vpop.eup %2008 }
0x2958   :  { %1498 = vrot.lane.b32.xlu1 %v2009_v54, %s2037_s3 }
0x29ca   :  { %v1499_v60 = vpop.permute.xlu1 %1498 }
0x29cb   :  { %v1501_v55 = vmul.f32 %v1499_v60, %v1484_v48 }
0x29cd   :  { %v1502_v8 = vpack.c.bf16 %v1501_v55, %v1501_v55 }
0x29cf   :  { %1515 = vrot.lane.b32.xlu0 %v1502_v8, %s2038_s19 }
0x2a41   :  { %v1516_v56 = vpop.permute.xlu0 %1515 }
0x2a42   :  { %1860 = vmatmul.mubr.msk.bf16.vlgmr.msra.gmra.mrb[40].mxu0 %vm176_vm5, %v1516_v56 }
0x2b15   :  { %v1566_v0 = vpop.f32.mrb[40].mxu0 }
0x2b16   :  { %v1567_v1 = vadd.f32 %v1639_v59, %v1566_v0  ;;  %v1861_v3 = vpop.f32.mrb[41].mxu0 }
0x2b17   :  { %v1569_v34 = vpop.f32.mrb[42].mxu0 }
0x2b18   :  { %v1862_v17 = vpop.f32.mrb[43].mxu0  ;;  %1573 = vst.msk [vmem:[#allocation3] sm:$0xff] %vm1572_vm6, %v1567_v1 }
0x2b19   :  { %2021 = shalt.err (!%p2018_p4)
}
0x2b1a   :  { %s2022_s8 = scalar_lea.hbm %s2505_s9, 128 }
0x2b1b   :  { %p2023_p5 = scmp.ne.s32.totalorder %s2505_s9, %s2022_s8  ;;  %p2026_p6 = scmp.lt.u32.totalorder %s2022_s8, %s2505_s9 }
0x2b1d   :  { %p2028_p7 = pnand %p2026_p6, %p2023_p5 }
0x2b1f   :  { %2031 = shalt.err (!%p2028_p7)
}
0x2b20   :  { %1583 = dma.vmem_to_hbm [thread:$0]  %s1581_s7, 128, %s2505_s9, [#allocation4]  }
0x2b21   :  { %2032 = dma.done.wait [#allocation4], 128  }
0x2b22   :  { %2033 = vsyncadd [#allocation4], 4294967168 }
0x2b23   :  { %1587 = vsyncpa [#allocation4], 1 }

</bundles_post_ra>
